<compile_context>
chip_gen: v5e
topology: v5e:2x2
jax: 0.10.0
libtpu: 0.0.40
codegen_flags: <defaults>
</compile_context>

<pallas_src>
import functools
import math

import numpy as np
import jax
import jax.numpy as jnp
from jax.experimental import pallas as pl
from jax.experimental.pallas import tpu as pltpu

_PI = math.pi
_DEG = 180.0 / _PI

_LANE_CAP = 1024          # max folded row width: bounds MXU K-work and S size
_MAX_FOLD = 128           # samples per folded row (cos lane-density saturates)
_BLOCK_BYTES = 8 << 20    # single-buffered x + y + out block budget (lane-padded)
_VMEM_LIMIT = 40 << 20    # <= ~48 MiB guidance for v7x's 64 MiB/TC VMEM


# ---------------------- divide-free float32 acos (Cephes) ----------------------
def _acos(x):
    """Branch-free Cephes acosf; x pre-clamped to (-1, 1).  No divides; the
    sqrt goes to the EUP, leaving ~25 VPU elementwise ops per value."""
    a = jnp.abs(x)
    big = a > 0.5
    z2 = jnp.where(big, 0.5 * (1.0 - a), a * a)
    s = jnp.where(big, jnp.sqrt(z2), a)
    p = 4.2163199048e-2
    p = p * z2 + 2.4181311049e-2
    p = p * z2 + 4.5470025998e-2
    p = p * z2 + 7.4953002686e-2
    p = p * z2 + 1.6666752422e-1
    asin_s = s * z2 * p + s                       # asin(s), s in [0, ~0.707]
    acos_a = jnp.where(big, 2.0 * asin_s, 0.5 * _PI - asin_s)
    return jnp.where(x < 0.0, _PI - acos_a, acos_a)


# ------------------------------- Pallas kernel ---------------------------------
def _angular_error_kernel(x_ref, y_ref, seg_ref, o_ref):
    x = x_ref[...].astype(jnp.float32)            # (TM, L)
    y = y_ref[...].astype(jnp.float32)
    seg = seg_ref[...]                            # (L, F) constant segment-sum

    # Per-sample reductions as MXU matmuls -> (TM, F).  Keeps the XLU idle;
    # the only VPU work on the big (TM, L) blocks is the 3 elementwise products.
    # f32 inputs + f32 accumulate on purpose (do NOT downcast to bf16).
    dot = jnp.dot(x * y, seg, preferred_element_type=jnp.float32)
    nx2 = jnp.dot(x * x, seg, preferred_element_type=jnp.float32)
    ny2 = jnp.dot(y * y, seg, preferred_element_type=jnp.float32)

    # rsqrt on the EUP; 1e-16 floor == (1e-8 denominator clamp)^2 of the ref.
    inv_norm = jax.lax.rsqrt(jnp.maximum(nx2 * ny2, 1e-16))
    cos = jnp.clip(dot * inv_norm, -1.0 + 1e-7, 1.0 - 1e-7)

    # acos runs on the (TM, F) result: F lanes wide, not a 1-lane column.
    o_ref[...] = (_acos(cos) * _DEG).astype(o_ref.dtype)


# ------------------------------- tiling helpers --------------------------------
def _round_up(v, m):
    return ((v + m - 1) // m) * m


def _pick_fold(n, c):
    """Largest F with (C*F) % 128 == 0, N % F == 0, F <= 128, C*F <= 1024."""
    f0 = 128 // math.gcd(c, 128)                  # minimal F making lanes dense
    if c * f0 > _LANE_CAP:
        return 1
    f_max = min(_MAX_FOLD, _LANE_CAP // c)
    f_max = (f_max // f0) * f0
    for f in range(f_max, 0, -f0):
        if n % f == 0:
            return f
    return 1


def _pick_tile_rows(m_rows, l_pad, f_pad):
    """Rows per block: ~4 MiB per input operand (x+y+out single-buffered budget
    8 MiB -> ~16-20 MiB double-buffered working set), capped so large problems
    keep >= ~8 grid steps (megacore sharding / pipeline depth on v7x)."""
    bytes_per_row = 4 * (2 * l_pad + f_pad)       # x + y + out, lane-padded
    budget_rows = max(8, (_BLOCK_BYTES // bytes_per_row) // 8 * 8)
    steps_cap = max(512, _round_up(pl.cdiv(m_rows, 8), 8))
    tile = min(budget_rows, steps_cap)
    if m_rows <= tile:
        return m_rows                             # single full-extent block
    return max(8, min(tile, (m_rows // 8) * 8))


# --------------------------------- wrapper --------------------------------------
@functools.partial(jax.jit, static_argnames="reduction")
def angular_error(inputs, targets, reduction: str = "mean"):
    """Pallas equivalent of F.angular_error(inputs, targets, reduction)."""
    assert inputs.shape == targets.shape and inputs.ndim == 2
    n, c = inputs.shape

    fold = _pick_fold(n, c)
    if fold > 1:
        m, lanes = n // fold, c * fold
        x2d = inputs.reshape(m, lanes)            # contiguous row-major regroup
        y2d = targets.reshape(m, lanes)
    else:
        m, lanes = n, c
        x2d, y2d = inputs, targets

    # Segment-sum matrix: S[j, j // c] = 1  =>  (prod @ S)[r, f] = per-sample sum
    # for sample r*fold + f.  Compile-time constant, loaded into VMEM once.
    seg = jnp.asarray(np.repeat(np.eye(fold, dtype=np.float32), c, axis=0))

    l_pad = _round_up(lanes, 128)
    f_pad = _round_up(fold, 128)
    tile_m = _pick_tile_rows(m, l_pad, f_pad)
    grid = (pl.cdiv(m, tile_m),)                  # ragged last block is fine

    out = pl.pallas_call(
        _angular_error_kernel,
        out_shape=jax.ShapeDtypeStruct((m, fold), jnp.float32),
        grid=grid,
        in_specs=[
            pl.BlockSpec((tile_m, lanes), lambda i: (i, 0)),
            pl.BlockSpec((tile_m, lanes), lambda i: (i, 0)),
            pl.BlockSpec((lanes, fold), lambda i: (0, 0)),   # constant block
        ],
        out_specs=pl.BlockSpec((tile_m, fold), lambda i: (i, 0)),
        compiler_params=pltpu.CompilerParams(
            dimension_semantics=("parallel",),
            vmem_limit_bytes=_VMEM_LIMIT,
        ),
    )(x2d, y2d, seg)

    # Row-major flatten restores sample order; [:n] drops any garbage produced
    # by the ragged last block BEFORE any reduction (do not remove this slice).
    ang = out.reshape(-1)[:n]
    if reduction == "none":
        return ang
    if reduction == "sum":
        return jnp.sum(ang)
    if reduction == "mean":
        return jnp.sum(ang) / n
    raise ValueError(f"unknown reduction: {reduction!r}")


class AngularError:
    """Mirror of the PyTorch module: AngularError(reduction)(inputs, targets)."""

    def __init__(self, reduction: str = "mean") -> None:
        self.reduction = reduction

    def __call__(self, inputs, targets):
        return angular_error(inputs, targets, reduction=self.reduction)


# ------------------------------ pure-JAX reference -----------------------------
def _reference(inputs, targets, reduction="mean"):
    dot = jnp.sum(inputs * targets, axis=-1)
    denom = jnp.maximum(
        jnp.linalg.norm(inputs, axis=-1) * jnp.linalg.norm(targets, axis=-1), 1e-8
    )
    cos = jnp.clip(dot / denom, -1.0 + 1e-7, 1.0 - 1e-7)
    ang = jnp.arccos(cos) * _DEG
    if reduction == "none":
        return ang
    if reduction == "sum":
        return jnp.sum(ang)
    return jnp.mean(ang)


if __name__ == "__main__":
    key = jax.random.PRNGKey(0)
    # (64, 32):  fold path (F=32, lane-folded, MXU segmented reduce).
    # (50, 32):  unfolded fallback (N not divisible by the fold factor).
    # (1000, 3): unfolded fallback with a multi-step grid and ragged last block.
    cases = [(64, 32), (50, 32), (1000, 3)]
    for (n, c) in cases:
        key, k1, k2 = jax.random.split(key, 3)
        inputs = jax.random.uniform(k1, (n, c), jnp.float32, minval=0.01, maxval=1.0)
        targets = jax.random.uniform(k2, (n, c), jnp.float32, minval=0.01, maxval=1.0)
        for red in ("mean", "sum", "none"):
            metric = AngularError(reduction=red)
            out = jax.block_until_ready(metric(inputs, targets))
            ref = _reference(inputs, targets, reduction=red)
            err = float(jnp.max(jnp.abs(out - ref)))
            tol = 1e-3 * max(1.0, float(jnp.max(jnp.abs(ref))))
            assert err < tol, ((n, c), red, err, tol)

    print("KERNEL_OK")
</pallas_src>

<mosaic_0001>
module attributes {stable_mosaic.version = 11 : i64} {
  func.func @_angular_error_kernel(%arg0: i32, %arg1: memref<2x1024xf32, #tpu.memory_space<vmem>>, %arg2: memref<2x1024xf32, #tpu.memory_space<vmem>>, %arg3: memref<1024x32xf32, #tpu.memory_space<vmem>>, %arg4: memref<2x32xf32, #tpu.memory_space<vmem>>) attributes {dimension_semantics = [#tpu.dimension_semantics<parallel>], iteration_bounds = array<i64: 1>, scalar_prefetch = 0 : i64, scratch_operands = 0 : i64, tpu.core_type = #tpu.core_type<tc>, window_params = [{transform_indices = @transform_0, window_bounds = array<i64: 2, 1024>}, {transform_indices = @transform_1, window_bounds = array<i64: 2, 1024>}, {pipeline_mode = #tpu.pipeline_mode<synchronous>, transform_indices = @transform_2, window_bounds = array<i64: 1024, 32>}, {transform_indices = @transform_3, window_bounds = array<i64: 2, 32>}]} {
    %c0 = arith.constant 0 : index
    %c0_0 = arith.constant 0 : index
    %0 = vector.load %arg1[%c0, %c0_0] : memref<2x1024xf32, #tpu.memory_space<vmem>>, vector<2x1024xf32>
    %c0_1 = arith.constant 0 : index
    %c0_2 = arith.constant 0 : index
    %1 = vector.load %arg2[%c0_1, %c0_2] : memref<2x1024xf32, #tpu.memory_space<vmem>>, vector<2x1024xf32>
    %c0_3 = arith.constant 0 : index
    %c0_4 = arith.constant 0 : index
    %2 = vector.load %arg3[%c0_3, %c0_4] : memref<1024x32xf32, #tpu.memory_space<vmem>>, vector<1024x32xf32>
    %3 = arith.mulf %0, %1 : vector<2x1024xf32>
    %cst = arith.constant dense<0.000000e+00> : vector<2x32xf32>
    %4 = tpu.matmul %3, %2, %cst {dimension_numbers = #tpu.dot_dimension_numbers<[1], [0], [0], [1], [0, 0, 1, 1], [], []>} : vector<2x1024xf32>, vector<1024x32xf32>, vector<2x32xf32> -> vector<2x32xf32>
    %5 = arith.mulf %0, %0 : vector<2x1024xf32>
    %cst_5 = arith.constant dense<0.000000e+00> : vector<2x32xf32>
    %6 = tpu.matmul %5, %2, %cst_5 {dimension_numbers = #tpu.dot_dimension_numbers<[1], [0], [0], [1], [0, 0, 1, 1], [], []>} : vector<2x1024xf32>, vector<1024x32xf32>, vector<2x32xf32> -> vector<2x32xf32>
    %7 = arith.mulf %1, %1 : vector<2x1024xf32>
    %cst_6 = arith.constant dense<0.000000e+00> : vector<2x32xf32>
    %8 = tpu.matmul %7, %2, %cst_6 {dimension_numbers = #tpu.dot_dimension_numbers<[1], [0], [0], [1], [0, 0, 1, 1], [], []>} : vector<2x1024xf32>, vector<1024x32xf32>, vector<2x32xf32> -> vector<2x32xf32>
    %9 = arith.mulf %6, %8 : vector<2x32xf32>
    %cst_7 = arith.constant 1.000000e-16 : f32
    %10 = vector.broadcast %cst_7 : f32 to vector<2x32xf32>
    %11 = arith.maximumf %9, %10 : vector<2x32xf32>
    %12 = math.rsqrt %11 : vector<2x32xf32>
    %13 = arith.mulf %4, %12 : vector<2x32xf32>
    %cst_8 = arith.constant -0.99999988 : f32
    %cst_9 = arith.constant 0.99999988 : f32
    %14 = vector.broadcast %cst_8 : f32 to vector<2x32xf32>
    %15 = arith.maximumf %14, %13 : vector<2x32xf32>
    %16 = vector.broadcast %cst_9 : f32 to vector<2x32xf32>
    %17 = arith.minimumf %16, %15 : vector<2x32xf32>
    %18 = math.absf %17 : vector<2x32xf32>
    %cst_10 = arith.constant 5.000000e-01 : f32
    %19 = vector.broadcast %cst_10 : f32 to vector<2x32xf32>
    %20 = arith.cmpf ogt, %18, %19 : vector<2x32xf32>
    %cst_11 = arith.constant 1.000000e+00 : f32
    %21 = vector.broadcast %cst_11 : f32 to vector<2x32xf32>
    %22 = arith.subf %21, %18 : vector<2x32xf32>
    %cst_12 = arith.constant 5.000000e-01 : f32
    %23 = vector.broadcast %cst_12 : f32 to vector<2x32xf32>
    %24 = arith.mulf %23, %22 : vector<2x32xf32>
    %25 = arith.mulf %18, %18 : vector<2x32xf32>
    %26 = arith.select %20, %24, %25 : vector<2x32xi1>, vector<2x32xf32>
    %27 = math.sqrt %26 : vector<2x32xf32>
    %28 = arith.select %20, %27, %18 : vector<2x32xi1>, vector<2x32xf32>
    %cst_13 = arith.constant 4.216320e-02 : f32
    %29 = vector.broadcast %cst_13 : f32 to vector<2x32xf32>
    %30 = arith.mulf %29, %26 : vector<2x32xf32>
    %cst_14 = arith.constant 0.024181312 : f32
    %31 = vector.broadcast %cst_14 : f32 to vector<2x32xf32>
    %32 = arith.addf %30, %31 : vector<2x32xf32>
    %33 = arith.mulf %32, %26 : vector<2x32xf32>
    %cst_15 = arith.constant 0.0454700254 : f32
    %34 = vector.broadcast %cst_15 : f32 to vector<2x32xf32>
    %35 = arith.addf %33, %34 : vector<2x32xf32>
    %36 = arith.mulf %35, %26 : vector<2x32xf32>
    %cst_16 = arith.constant 0.0749530047 : f32
    %37 = vector.broadcast %cst_16 : f32 to vector<2x32xf32>
    %38 = arith.addf %36, %37 : vector<2x32xf32>
    %39 = arith.mulf %38, %26 : vector<2x32xf32>
    %cst_17 = arith.constant 0.166667521 : f32
    %40 = vector.broadcast %cst_17 : f32 to vector<2x32xf32>
    %41 = arith.addf %39, %40 : vector<2x32xf32>
    %42 = arith.mulf %28, %26 : vector<2x32xf32>
    %43 = arith.mulf %42, %41 : vector<2x32xf32>
    %44 = arith.addf %43, %28 : vector<2x32xf32>
    %cst_18 = arith.constant 2.000000e+00 : f32
    %45 = vector.broadcast %cst_18 : f32 to vector<2x32xf32>
    %46 = arith.mulf %45, %44 : vector<2x32xf32>
    %cst_19 = arith.constant 1.57079637 : f32
    %47 = vector.broadcast %cst_19 : f32 to vector<2x32xf32>
    %48 = arith.subf %47, %44 : vector<2x32xf32>
    %49 = arith.select %20, %46, %48 : vector<2x32xi1>, vector<2x32xf32>
    %cst_20 = arith.constant 0.000000e+00 : f32
    %50 = vector.broadcast %cst_20 : f32 to vector<2x32xf32>
    %51 = arith.cmpf olt, %17, %50 : vector<2x32xf32>
    %cst_21 = arith.constant 3.14159274 : f32
    %52 = vector.broadcast %cst_21 : f32 to vector<2x32xf32>
    %53 = arith.subf %52, %49 : vector<2x32xf32>
    %54 = arith.select %51, %53, %49 : vector<2x32xi1>, vector<2x32xf32>
    %cst_22 = arith.constant 57.2957802 : f32
    %55 = vector.broadcast %cst_22 : f32 to vector<2x32xf32>
    %56 = arith.mulf %54, %55 : vector<2x32xf32>
    %c0_23 = arith.constant 0 : index
    %c0_24 = arith.constant 0 : index
    %57 = vector.load %arg4[%c0_23, %c0_24] : memref<2x32xf32, #tpu.memory_space<vmem>>, vector<2x32xf32>
    tpu.vector_store %arg4[%c0_23, %c0_24], %56 {strides = array<i32>} : memref<2x32xf32, #tpu.memory_space<vmem>>, vector<2x32xf32>,
    return
  }
  func.func @transform_0(%arg0: i32) -> (i32, i32) {
    %c0_i32 = arith.constant 0 : i32
    %c0_i32_0 = arith.constant 0 : i32
    return %arg0, %c0_i32 : i32, i32
  }
  func.func @transform_1(%arg0: i32) -> (i32, i32) {
    %c0_i32 = arith.constant 0 : i32
    %c0_i32_0 = arith.constant 0 : i32
    return %arg0, %c0_i32 : i32, i32
  }
  func.func @transform_2(%arg0: i32) -> (i32, i32) {
    %c0_i32 = arith.constant 0 : i32
    %c0_i32_0 = arith.constant 0 : i32
    %c0_i32_1 = arith.constant 0 : i32
    return %c0_i32, %c0_i32_0 : i32, i32
  }
  func.func @transform_3(%arg0: i32) -> (i32, i32) {
    %c0_i32 = arith.constant 0 : i32
    %c0_i32_0 = arith.constant 0 : i32
    return %arg0, %c0_i32 : i32, i32
  }
}

</mosaic_0001>

<bundles_post_ra>
// kernel: angular_error.1
= control target key start
LH: loop header
LB: loop body
LE: loop exit
PB: predicated region body
PF: predicated region fallthrough
CT: control target
= control target key end

     0   :  { %8 = vsyncpa [#allocation3], 0  ;;  %s804_s15 = smov [#allocation2]   ;;  %s805_s17 = smov 128   ;;  %s1513_s0 = inlined_call_operand.vmem [shape: f32[2,1024], index: 0, kind: input, shape index: {}]   ;;  %s1514_s1 = inlined_call_operand.vmem [shape: f32[2,1024], index: 1, kind: input, shape index: {}]   ;;  %s1515_s2 = inlined_call_operand.hbm [shape: f32[1024,32], index: 2, kind: input, shape index: {}]   ;;  %s1516_s3 = inlined_call_operand.vmem [shape: f32[2,32], index: 3, kind: output, shape index: {}]  }
   0x1   :  { %s17_s14 = sshll.u32 %s1515_s2, 4  ;;  %s19_s16 = sshll.u32 %s804_s15, 4  ;;  %s18_s14 = int_to_ptr.hbm [resolvable:$true] %s17_s14  ;;  %s20_s16 = int_to_ptr.vmem [resolvable:$true] %s19_s16 }
   0x2   :  { %s806_s18 = smov 8  }
   0x3   :  { %25 = dma.hbm_to_vmem [thread:$0]  %s18_s14, 16384, %s20_s16, [#allocation3], %s805_s17, %s805_s17, %s806_s18  }
   0x4   :  { %802 = dma.done.wait [#allocation3], 16384  }
   0x5   :  { %803 = vsyncadd [#allocation3], 4294950912  ;;  %v830_v0 = vld [vmem:[#allocation2 + $0x78] sm:$0xff]  ;;  %v834_v2 = vld [vmem:[#allocation2 + $0x70] sm:$0xff]  ;;  %vm763_vm7 = vcmask 254976  }
   0x6   :  { %v832_v1 = vld [vmem:[#allocation2 + $0x178] sm:$0xff]  ;;  %185 = vmatpush.msra.mxu0 %v830_v0  ;;  %v840_v4 = vld [vmem:[#allocation2 + $0x170] sm:$0xff]  ;;  %v846_v6 = vld [vmem:[#allocation2 + $0x68] sm:$0xff] }
   0x7   :  { %225 = vmatpush.msra.mxu2 %v832_v1  ;;  %v838_v3 = vld [vmem:[#allocation2 + $0xf8] sm:$0xff]  ;;  %v848_v7 = vld [vmem:[#allocation2 + $0xf0] sm:$0xff]  ;;  %v850_v8 = vld [vmem:[#allocation2 + $0x168] sm:$0xff] }
   0x8   :  { %v842_v5 = vld [vmem:[#allocation2 + $0x1f8] sm:$0xff]  ;;  %205 = vmatpush.msra.mxu1 %v838_v3  ;;  %186 = vmatpush.msra.mxu0 %v834_v2  ;;  %v854_v9 = vld [vmem:[#allocation2 + $0x1f0] sm:$0xff]  ;;  %v856_v10 = vld [vmem:[#allocation2 + $0xe8] sm:$0xff] }
   0x9   :  { %245 = vmatpush.msra.mxu3 %v842_v5  ;;  %226 = vmatpush.msra.mxu2 %v840_v4  ;;  %v860_v11 = vld [vmem:[#allocation2 + $0x60] sm:$0xff]  ;;  %v864_v13 = vld [vmem:[#allocation2 + $0x1e8] sm:$0xff]  ;;  %v874_v16 = vld [vmem:[#allocation2 + $0x58] sm:$0xff] }
   0xa   :  { %206 = vmatpush.msra.mxu1 %v848_v7  ;;  %v862_v12 = vld [vmem:[#allocation2 + $0x160] sm:$0xff]  ;;  %187 = vmatpush.msra.mxu0 %v846_v6  ;;  %v876_v17 = vld [vmem:[#allocation2 + $0x158] sm:$0xff]  ;;  %v886_v20 = vld [vmem:[#allocation2 + $0x50] sm:$0xff] }
   0xb   :  { %246 = vmatpush.msra.mxu3 %v854_v9  ;;  %227 = vmatpush.msra.mxu2 %v850_v8  ;;  %v868_v14 = vld [vmem:[#allocation2 + $0xe0] sm:$0xff]  ;;  %v880_v18 = vld [vmem:[#allocation2 + $0xd8] sm:$0xff]  ;;  %v888_v21 = vld [vmem:[#allocation2 + $0x150] sm:$0xff] }
   0xc   :  { %v870_v15 = vld [vmem:[#allocation2 + $0x1e0] sm:$0xff]  ;;  %207 = vmatpush.msra.mxu1 %v856_v10  ;;  %188 = vmatpush.msra.mxu0 %v860_v11  ;;  %v882_v19 = vld [vmem:[#allocation2 + $0x1d8] sm:$0xff]  ;;  %v892_v22 = vld [vmem:[#allocation2 + $0xd0] sm:$0xff] }
   0xd   :  { %247 = vmatpush.msra.mxu3 %v864_v13  ;;  %228 = vmatpush.msra.mxu2 %v862_v12  ;;  %v894_v23 = vld [vmem:[#allocation2 + $0x1d0] sm:$0xff]  ;;  %v898_v24 = vld [vmem:[#allocation2 + $0x48] sm:$0xff]  ;;  %v910_v28 = vld [vmem:[#allocation2 + $0x40] sm:$0xff] }
   0xe   :  { %208 = vmatpush.msra.mxu1 %v868_v14  ;;  %189 = vmatpush.msra.mxu0 %v874_v16  ;;  %v900_v25 = vld [vmem:[#allocation2 + $0x148] sm:$0xff]  ;;  %v912_v29 = vld [vmem:[#allocation2 + $0x140] sm:$0xff]  ;;  %v922_v32 = vld [vmem:[#allocation2 + $0x38] sm:$0xff] }
   0xf   :  { %248 = vmatpush.msra.mxu3 %v870_v15  ;;  %229 = vmatpush.msra.mxu2 %v876_v17  ;;  %v904_v26 = vld [vmem:[#allocation2 + $0xc8] sm:$0xff]  ;;  %v916_v30 = vld [vmem:[#allocation2 + $0xc0] sm:$0xff]  ;;  %v924_v33 = vld [vmem:[#allocation2 + $0x138] sm:$0xff] }
  0x10   :  { %209 = vmatpush.msra.mxu1 %v880_v18  ;;  %190 = vmatpush.msra.mxu0 %v886_v20  ;;  %v906_v27 = vld [vmem:[#allocation2 + $0x1c8] sm:$0xff]  ;;  %1675 = vst [vmem:[#allocation5_spill] sm:$0xff] %v916_v30  ;;  %v918_v31 = vld [vmem:[#allocation2 + $0x1c0] sm:$0xff]  ;;  %v928_v34 = vld [vmem:[#allocation2 + $0xb8] sm:$0xff] }
  0x11   :  { %249 = vmatpush.msra.mxu3 %v882_v19  ;;  %230 = vmatpush.msra.mxu2 %v888_v21  ;;  %1676 = vst [vmem:[#allocation6_spill] sm:$0xff] %v918_v31  ;;  %v930_v35 = vld [vmem:[#allocation2 + $0x1b8] sm:$0xff]  ;;  %v934_v36 = vld [vmem:[#allocation2 + $0x30] sm:$0xff]  ;;  %v946_v40 = vld [vmem:[#allocation2 + $0x28] sm:$0xff] }
  0x12   :  { %210 = vmatpush.msra.mxu1 %v892_v22  ;;  %191 = vmatpush.msra.mxu0 %v898_v24  ;;  %1677 = vst [vmem:[#allocation7_spill] sm:$0xff] %v924_v33  ;;  %v936_v37 = vld [vmem:[#allocation2 + $0x130] sm:$0xff]  ;;  %v948_v41 = vld [vmem:[#allocation2 + $0x128] sm:$0xff]  ;;  %v958_v44 = vld [vmem:[#allocation2 + $0x20] sm:$0xff] }
  0x13   :  { %250 = vmatpush.msra.mxu3 %v894_v23  ;;  %231 = vmatpush.msra.mxu2 %v900_v25  ;;  %1678 = vst [vmem:[#allocation8_spill] sm:$0xff] %v928_v34  ;;  %v940_v38 = vld [vmem:[#allocation2 + $0xb0] sm:$0xff]  ;;  %v952_v42 = vld [vmem:[#allocation2 + $0xa8] sm:$0xff]  ;;  %v960_v45 = vld [vmem:[#allocation2 + $0x120] sm:$0xff] }
  0x14   :  { %211 = vmatpush.msra.mxu1 %v904_v26  ;;  %192 = vmatpush.msra.mxu0 %v910_v28  ;;  %1679 = vst [vmem:[#allocation9_spill] sm:$0xff] %v930_v35  ;;  %v942_v39 = vld [vmem:[#allocation2 + $0x1b0] sm:$0xff]  ;;  %v954_v43 = vld [vmem:[#allocation2 + $0x1a8] sm:$0xff]  ;;  %v964_v46 = vld [vmem:[#allocation2 + $0xa0] sm:$0xff] }
  0x15   :  { %251 = vmatpush.msra.mxu3 %v906_v27  ;;  %232 = vmatpush.msra.mxu2 %v912_v29  ;;  %1680 = vst [vmem:[#allocation10_spill] sm:$0xff] %v934_v36  ;;  %v966_v47 = vld [vmem:[#allocation2 + $0x1a0] sm:$0xff]  ;;  %v970_v48 = vld [vmem:[#allocation2 + $0x18] sm:$0xff]  ;;  %v982_v52 = vld [vmem:[#allocation2 + $0x10] sm:$0xff] }
  0x16   :  { %212 = vmatpush.msra.mxu1 %v916_v30  ;;  %1681 = vst [vmem:[#allocation11_spill] sm:$0xff] %v936_v37  ;;  %193 = vmatpush.msra.mxu0 %v922_v32  ;;  %v972_v49 = vld [vmem:[#allocation2 + $0x118] sm:$0xff]  ;;  %v984_v53 = vld [vmem:[#allocation2 + $0x110] sm:$0xff]  ;;  %v994_v56 = vld [vmem:[#allocation2 + $0x8] sm:$0xff] }
  0x17   :  { %252 = vmatpush.msra.mxu3 %v918_v31  ;;  %233 = vmatpush.msra.mxu2 %v924_v33  ;;  %1682 = vst [vmem:[#allocation12_spill] sm:$0xff] %v940_v38  ;;  %v976_v50 = vld [vmem:[#allocation2 + $0x98] sm:$0xff]  ;;  %v988_v54 = vld [vmem:[#allocation2 + $0x90] sm:$0xff]  ;;  %v996_v57 = vld [vmem:[#allocation2 + $0x108] sm:$0xff] }
  0x18   :  { %1683 = vst [vmem:[#allocation13_spill] sm:$0xff] %v942_v39  ;;  %213 = vmatpush.msra.mxu1 %v928_v34  ;;  %194 = vmatpush.msra.mxu0 %v934_v36  ;;  %v978_v51 = vld [vmem:[#allocation2 + $0x198] sm:$0xff]  ;;  %v990_v55 = vld [vmem:[#allocation2 + $0x190] sm:$0xff]  ;;  %v1000_v58 = vld [vmem:[#allocation2 + $0x88] sm:$0xff] }
  0x19   :  { %253 = vmatpush.msra.mxu3 %v930_v35  ;;  %1684 = vst [vmem:[#allocation14_spill] sm:$0xff] %v946_v40  ;;  %234 = vmatpush.msra.mxu2 %v936_v37  ;;  %v1002_v59 = vld [vmem:[#allocation2 + $0x188] sm:$0xff]  ;;  %v1006_v60 = vld [vmem:[#allocation2] sm:$0xff]  ;;  %v1012_v62 = vld [vmem:[#allocation2 + $0x278] sm:$0xff] }
  0x1a   :  { %1685 = vst [vmem:[#allocation15_spill] sm:$0xff] %v948_v41  ;;  %214 = vmatpush.msra.mxu1 %v940_v38  ;;  %195 = vmatpush.msra.mxu0 %v946_v40  ;;  %v1008_v61 = vld [vmem:[#allocation2 + $0x100] sm:$0xff]  ;;  %v1014_v63 = vld [vmem:[#allocation2 + $0x378] sm:$0xff] }
  0x1b   :  { %1686 = vst [vmem:[#allocation16_spill] sm:$0xff] %v952_v42  ;;  %254 = vmatpush.msra.mxu3 %v942_v39  ;;  %235 = vmatpush.msra.mxu2 %v948_v41 }
  0x1c   :  { %1687 = vst [vmem:[#allocation17_spill] sm:$0xff] %v954_v43  ;;  %215 = vmatpush.msra.mxu1 %v952_v42  ;;  %196 = vmatpush.msra.mxu0 %v958_v44  ;;  %v1184_v42 = vld [vmem:[#allocation2 + $0x298] sm:$0xff] }
  0x1d   :  { %1688 = vst [vmem:[#allocation18_spill] sm:$0xff] %v958_v44  ;;  %255 = vmatpush.msra.mxu3 %v954_v43  ;;  %236 = vmatpush.msra.mxu2 %v960_v45  ;;  %v1194_v44 = vld [vmem:[#allocation2 + $0x398] sm:$0xff] }
  0x1e   :  { %1689 = vst [vmem:[#allocation19_spill] sm:$0xff] %v960_v45  ;;  %216 = vmatpush.msra.mxu1 %v964_v46  ;;  %197 = vmatpush.msra.mxu0 %v970_v48 }
  0x1f   :  { %1690 = vst [vmem:[#allocation20_spill] sm:$0xff] %v964_v46  ;;  %256 = vmatpush.msra.mxu3 %v966_v47  ;;  %237 = vmatpush.msra.mxu2 %v972_v49  ;;  %v1166_v46 = vld [vmem:[#allocation2 + $0x3a8] sm:$0xff] }
  0x20   :  { %1691 = vst [vmem:[#allocation21_spill] sm:$0xff] %v966_v47  ;;  %217 = vmatpush.msra.mxu1 %v976_v50  ;;  %198 = vmatpush.msra.mxu0 %v982_v52  ;;  %v1128_v47 = vld [vmem:[#allocation2 + $0x2c0] sm:$0xff] }
  0x21   :  { %1692 = vst [vmem:[#allocation22_spill] sm:$0xff] %v970_v48  ;;  %257 = vmatpush.msra.mxu3 %v978_v51  ;;  %238 = vmatpush.msra.mxu2 %v984_v53 }
  0x22   :  { %1693 = vst [vmem:[#allocation23_spill] sm:$0xff] %v972_v49  ;;  %218 = vmatpush.msra.mxu1 %v988_v54  ;;  %199 = vmatpush.msra.mxu0 %v994_v56 }
  0x23   :  { %1694 = vst [vmem:[#allocation24_spill] sm:$0xff] %v976_v50  ;;  %258 = vmatpush.msra.mxu3 %v990_v55  ;;  %239 = vmatpush.msra.mxu2 %v996_v57  ;;  %v1107_v50 = vld [vmem:[#allocation2 + $0x2c8] sm:$0xff] }
  0x24   :  { %1695 = vst [vmem:[#allocation25_spill] sm:$0xff] %v978_v51  ;;  %219 = vmatpush.msra.mxu1 %v1000_v58  ;;  %v1018_v51 = vld [vmem:[#allocation2 + $0x80] sm:$0xff]  ;;  %200 = vmatpush.msra.mxu0 %v1006_v60 }
  0x25   :  { %1696 = vst [vmem:[#allocation26_spill] sm:$0xff] %v982_v52  ;;  %259 = vmatpush.msra.mxu3 %v1002_v59  ;;  %240 = vmatpush.msra.mxu2 %v1008_v61  ;;  %v1126_v52 = vld [vmem:[#allocation2 + $0x238] sm:$0xff] }
  0x26   :  { %1697 = vst [vmem:[#allocation27_spill] sm:$0xff] %v984_v53  ;;  %265 = vmatpush.msrb.mxu0 %v1012_v62  ;;  %220 = vmatpush.msra.mxu1 %v1018_v51  ;;  %v1100_v53 = vld [vmem:[#allocation2 + $0x3d0] sm:$0xff] }
  0x27   :  { %1698 = vst [vmem:[#allocation28_spill] sm:$0xff] %v988_v54  ;;  %v1020_v54 = vld [vmem:[#allocation2 + $0x180] sm:$0xff]  ;;  %305 = vmatpush.msrb.mxu2 %v1014_v63 }
  0x28   :  { %1699 = vst [vmem:[#allocation29_spill] sm:$0xff] %v990_v55  ;;  %v1024_v55 = vld [vmem:[#allocation2 + $0x270] sm:$0xff]  ;;  %260 = vmatpush.msra.mxu3 %v1020_v54 }
  0x29   :  { %1700 = vst [vmem:[#allocation30_spill] sm:$0xff] %v994_v56  ;;  %v1026_v56 = vld [vmem:[#allocation2 + $0x2f8] sm:$0xff]  ;;  %266 = vmatpush.msrb.mxu0 %v1024_v55 }
  0x2a   :  { %1701 = vst [vmem:[#allocation31_spill] sm:$0xff] %v996_v57  ;;  %v1030_v57 = vld [vmem:[#allocation2 + $0x370] sm:$0xff]  ;;  %285 = vmatpush.msrb.mxu1 %v1026_v56 }
  0x2b   :  { %1702 = vst [vmem:[#allocation32_spill] sm:$0xff] %v1000_v58  ;;  %v1032_v58 = vld [vmem:[#allocation2 + $0x3f8] sm:$0xff]  ;;  %306 = vmatpush.msrb.mxu2 %v1030_v57 }
  0x2c   :  { %1703 = vst [vmem:[#allocation33_spill] sm:$0xff] %v1002_v59  ;;  %v1036_v59 = vld [vmem:[#allocation2 + $0x268] sm:$0xff]  ;;  %325 = vmatpush.msrb.mxu3 %v1032_v58 }
  0x2d   :  { %1704 = vst [vmem:[#allocation34_spill] sm:$0xff] %v1006_v60  ;;  %v1038_v60 = vld [vmem:[#allocation2 + $0x2f0] sm:$0xff]  ;;  %267 = vmatpush.msrb.mxu0 %v1036_v59 }
  0x2e   :  { %1705 = vst [vmem:[#allocation35_spill] sm:$0xff] %v1008_v61  ;;  %v1042_v61 = vld [vmem:[#allocation2 + $0x368] sm:$0xff]  ;;  %286 = vmatpush.msrb.mxu1 %v1038_v60 }
  0x2f   :  { %1706 = vst [vmem:[#allocation36_spill] sm:$0xff] %v1012_v62  ;;  %v1044_v62 = vld [vmem:[#allocation2 + $0x3f0] sm:$0xff]  ;;  %307 = vmatpush.msrb.mxu2 %v1042_v61 }
  0x30   :  { %1707 = vst [vmem:[#allocation37_spill] sm:$0xff] %v1014_v63  ;;  %v1048_v63 = vld [vmem:[#allocation2 + $0x260] sm:$0xff]  ;;  %326 = vmatpush.msrb.mxu3 %v1044_v62 }
  0x31   :  { %1708 = vst [vmem:[#allocation38_spill] sm:$0xff] %v1018_v51  ;;  %v1050_v51 = vld [vmem:[#allocation2 + $0x2e8] sm:$0xff]  ;;  %268 = vmatpush.msrb.mxu0 %v1048_v63 }
  0x32   :  { %1709 = vst [vmem:[#allocation39_spill] sm:$0xff] %v1020_v54  ;;  %v1054_v54 = vld [vmem:[#allocation2 + $0x360] sm:$0xff]  ;;  %287 = vmatpush.msrb.mxu1 %v1050_v51 }
  0x33   :  { %1710 = vst [vmem:[#allocation40_spill] sm:$0xff] %v1024_v55  ;;  %v1056_v55 = vld [vmem:[#allocation2 + $0x3e8] sm:$0xff]  ;;  %308 = vmatpush.msrb.mxu2 %v1054_v54 }
  0x34   :  { %1711 = vst [vmem:[#allocation41_spill] sm:$0xff] %v1026_v56  ;;  %v1060_v56 = vld [vmem:[#allocation2 + $0x258] sm:$0xff]  ;;  %327 = vmatpush.msrb.mxu3 %v1056_v55 }
  0x35   :  { %1712 = vst [vmem:[#allocation42_spill] sm:$0xff] %v1030_v57  ;;  %v1062_v57 = vld [vmem:[#allocation2 + $0x2e0] sm:$0xff]  ;;  %269 = vmatpush.msrb.mxu0 %v1060_v56 }
  0x36   :  { %1713 = vst [vmem:[#allocation43_spill] sm:$0xff] %v1032_v58  ;;  %v1066_v58 = vld [vmem:[#allocation2 + $0x358] sm:$0xff]  ;;  %288 = vmatpush.msrb.mxu1 %v1062_v57 }
  0x37   :  { %1714 = vst [vmem:[#allocation44_spill] sm:$0xff] %v1036_v59  ;;  %v1068_v59 = vld [vmem:[#allocation2 + $0x3e0] sm:$0xff]  ;;  %309 = vmatpush.msrb.mxu2 %v1066_v58 }
  0x38   :  { %1715 = vst [vmem:[#allocation45_spill] sm:$0xff] %v1038_v60  ;;  %v1072_v60 = vld [vmem:[#allocation2 + $0x250] sm:$0xff]  ;;  %328 = vmatpush.msrb.mxu3 %v1068_v59 }
  0x39   :  { %1716 = vst [vmem:[#allocation46_spill] sm:$0xff] %v1042_v61  ;;  %v1074_v61 = vld [vmem:[#allocation2 + $0x2d8] sm:$0xff]  ;;  %270 = vmatpush.msrb.mxu0 %v1072_v60 }
  0x3a   :  { %1717 = vst [vmem:[#allocation47_spill] sm:$0xff] %v1044_v62  ;;  %v1078_v62 = vld [vmem:[#allocation2 + $0x350] sm:$0xff]  ;;  %289 = vmatpush.msrb.mxu1 %v1074_v61 }
  0x3b   :  { %1718 = vst [vmem:[#allocation48_spill] sm:$0xff] %v1048_v63  ;;  %v1080_v63 = vld [vmem:[#allocation2 + $0x3d8] sm:$0xff]  ;;  %310 = vmatpush.msrb.mxu2 %v1078_v62 }
  0x3c   :  { %1719 = vst [vmem:[#allocation49_spill] sm:$0xff] %v1050_v51  ;;  %v30_v51 = vld [vmem:[%s1513_s0] sm:$0xff]  ;;  %329 = vmatpush.msrb.mxu3 %v1080_v63 }
  0x3d   :  { %1720 = vst [vmem:[#allocation50_spill] sm:$0xff] %v1054_v54  ;;  %v1089_v54 = vld [vmem:[#allocation2 + $0x2d0] sm:$0xff]  ;;  %v345_v49 = vmul.f32 %v30_v51, %v30_v51 }
  0x3e   :  { %1721 = vst [vmem:[#allocation51_spill] sm:$0xff] %v1056_v55  ;;  %v1087_v55 = vld [vmem:[#allocation2 + $0x248] sm:$0xff]  ;;  %290 = vmatpush.msrb.mxu1 %v1089_v54  ;;  %330 = vmatpush.msrb.mxu3 %v1100_v53 }
  0x3f   :  { %1722 = vst [vmem:[#allocation52_spill] sm:$0xff] %v1060_v56  ;;  %v1098_v56 = vld [vmem:[#allocation2 + $0x348] sm:$0xff]  ;;  %271 = vmatpush.msrb.mxu0 %v1087_v55 }
  0x40   :  { %1723 = vst [vmem:[#allocation53_spill] sm:$0xff] %v1062_v57  ;;  %v1094_v57 = vld [vmem:[%s1514_s1] sm:$0xff]  ;;  %311 = vmatpush.msrb.mxu2 %v1098_v56  ;;  %291 = vmatpush.msrb.mxu1 %v1107_v50 }
  0x41   :  { %1724 = vst [vmem:[#allocation54_spill] sm:$0xff] %v1066_v58  ;;  %v1102_v58 = vld [vmem:[#allocation2 + $0x240] sm:$0xff] }
  0x42   :  { %1725 = vst [vmem:[#allocation55_spill] sm:$0xff] %v1068_v59  ;;  %v162_v59 = vmul.f32 %v1094_v57, %v30_v51  ;;  %272 = vmatpush.msrb.mxu0 %v1102_v58  ;;  %292 = vmatpush.msrb.mxu1 %v1128_v47 }
  0x43   :  { %1726 = vst [vmem:[#allocation56_spill] sm:$0xff] %v1072_v60  ;;  %v31_v60 = vld [vmem:[%s1513_s0 + $0x8] sm:$0xff] }
  0x44   :  { %1727 = vst [vmem:[#allocation57_spill] sm:$0xff] %v1074_v61  ;;  %v1115_v61 = vld [vmem:[%s1514_s1 + $0x8] sm:$0xff]  ;;  %273 = vmatpush.msrb.mxu0 %v1126_v52  ;;  %v346_v45 = vmul.f32 %v31_v60, %v31_v60 }
  0x45   :  { %1728 = vst [vmem:[#allocation58_spill] sm:$0xff] %v1078_v62  ;;  %v1121_v62 = vld [vmem:[#allocation2 + $0x3c8] sm:$0xff] }
  0x46   :  { %1729 = vst [vmem:[#allocation59_spill] sm:$0xff] %v1080_v63  ;;  %v163_v63 = vmul.f32 %v1115_v61, %v31_v60  ;;  %331 = vmatpush.msrb.mxu3 %v1121_v62 }
  0x47   :  { %1730 = vst [vmem:[#allocation60_spill] sm:$0xff] %v1087_v55  ;;  %v1134_v55 = vld [vmem:[#allocation2 + $0x3c0] sm:$0xff] }
  0x48   :  { %1731 = vst [vmem:[#allocation61_spill] sm:$0xff] %v1089_v54  ;;  %v1132_v54 = vld [vmem:[#allocation2 + $0x338] sm:$0xff]  ;;  %332 = vmatpush.msrb.mxu3 %v1134_v55 }
  0x49   :  { %1732 = vst [vmem:[#allocation62_spill] sm:$0xff] %v1094_v57  ;;  %v1119_v57 = vld [vmem:[#allocation2 + $0x340] sm:$0xff] }
  0x4a   :  { %1733 = vst [vmem:[#allocation63_spill] sm:$0xff] %v1098_v56  ;;  %312 = vmatpush.msrb.mxu2 %v1119_v57  ;;  %v1142_v56 = vld [vmem:[#allocation2 + $0x330] sm:$0xff] }
  0x4b   :  { %1734 = vst [vmem:[#allocation64_spill] sm:$0xff] %v1100_v53  ;;  %v1140_v53 = vld [vmem:[#allocation2 + $0x2b8] sm:$0xff] }
  0x4c   :  { %1735 = vst [vmem:[#allocation65_spill] sm:$0xff] %v1102_v58  ;;  %v1148_v58 = vld [vmem:[#allocation2 + $0x228] sm:$0xff]  ;;  %313 = vmatpush.msrb.mxu2 %v1132_v54  ;;  %293 = vmatpush.msrb.mxu1 %v1140_v53 }
  0x4d   :  { %1736 = vst [vmem:[#allocation66_spill] sm:$0xff] %v1107_v50  ;;  %v1146_v50 = vld [vmem:[#allocation2 + $0x3b8] sm:$0xff] }
  0x4e   :  { %1737 = vst [vmem:[#allocation67_spill] sm:$0xff] %v1115_v61  ;;  %v1150_v61 = vld [vmem:[#allocation2 + $0x2b0] sm:$0xff]  ;;  %314 = vmatpush.msrb.mxu2 %v1142_v56  ;;  %333 = vmatpush.msrb.mxu3 %v1146_v50 }
  0x4f   :  { %1738 = vst [vmem:[#allocation68_spill] sm:$0xff] %v1119_v57  ;;  %v1158_v57 = vld [vmem:[#allocation2 + $0x220] sm:$0xff]  ;;  %294 = vmatpush.msrb.mxu1 %v1150_v61 }
  0x50   :  { %1739 = vst [vmem:[#allocation69_spill] sm:$0xff] %v1121_v62  ;;  %v1156_v62 = vld [vmem:[#allocation2 + $0x3b0] sm:$0xff] }
  0x51   :  { %166 = vst [vmem:[#allocation1] ss:$4 sm:$0xff] %v162_v59  ;;  %v1138_v59 = vld [vmem:[#allocation2 + $0x230] sm:$0xff]  ;;  %334 = vmatpush.msrb.mxu3 %v1156_v62 }
  0x52   :  { %1740 = vst [vmem:[#allocation70_spill] sm:$0xff] %v1126_v52  ;;  %274 = vmatpush.msrb.mxu0 %v1138_v59  ;;  %v1164_v52 = vld [vmem:[#allocation2 + $0x320] sm:$0xff] }
  0x53   :  { %1741 = vst [vmem:[#allocation71_spill] sm:$0xff] %v1128_v47  ;;  %v1162_v47 = vld [vmem:[#allocation2 + $0x2a8] sm:$0xff]  ;;  %335 = vmatpush.msrb.mxu3 %v1166_v46 }
  0x54   :  { %1742 = vst [vmem:[#allocation72_spill] sm:$0xff] %v1132_v54  ;;  %v1172_v54 = vld [vmem:[#allocation2 + $0x2a0] sm:$0xff]  ;;  %275 = vmatpush.msrb.mxu0 %v1148_v58  ;;  %295 = vmatpush.msrb.mxu1 %v1162_v47 }
  0x55   :  { %1743 = vst [vmem:[#allocation73_spill] sm:$0xff] %v1134_v55  ;;  %v1170_v55 = vld [vmem:[#allocation2 + $0x218] sm:$0xff] }
  0x56   :  { %168 = vst [vmem:[#allocation1 + $0x20] ss:$4 sm:$0xff] %v163_v63  ;;  %v1154_v63 = vld [vmem:[#allocation2 + $0x328] sm:$0xff]  ;;  %276 = vmatpush.msrb.mxu0 %v1158_v57  ;;  %296 = vmatpush.msrb.mxu1 %v1172_v54 }
  0x57   :  { %1744 = vst [vmem:[#allocation74_spill] sm:$0xff] %v1138_v59  ;;  %315 = vmatpush.msrb.mxu2 %v1154_v63 }
  0x58   :  { %1745 = vst [vmem:[#allocation75_spill] sm:$0xff] %v1140_v53  ;;  %v171_v48 = vld.sshfl [vmem:[#allocation1 + $0x10] sm:$0xff pattern:$0x73625140]  ;;  %v1176_v53 = vld [vmem:[#allocation2 + $0x318] sm:$0xff]  ;;  %277 = vmatpush.msrb.mxu0 %v1170_v55  ;;  %297 = vmatpush.msrb.mxu1 %v1184_v42 }
  0x59   :  { %1746 = vst [vmem:[#allocation76_spill] sm:$0xff] %v1142_v56  ;;  %v169_v51 = vld.sshfl [vmem:[#allocation1] sm:$0xff pattern:$0x73625140]  ;;  %v1182_v56 = vld [vmem:[#allocation2 + $0x210] sm:$0xff]  ;;  %316 = vmatpush.msrb.mxu2 %v1164_v52 }
  0x5a   :  { %1747 = vst [vmem:[#allocation77_spill] sm:$0xff] %v1146_v50  ;;  %v172_v59 = vld.sshfl [vmem:[#allocation1 + $0x18] sm:$0xff pattern:$0x73625140]  ;;  %v1180_v50 = vld [vmem:[#allocation2 + $0x3a0] sm:$0xff]  ;;  %278 = vmatpush.msrb.mxu0 %v1182_v56  ;;  %241 = vmatmul.f32.vlgmr.msra.gmra.mxu2 %v171_v48  ;;  %v1762_v48 = vld [vmem:[#allocation16_spill] sm:$0xff] }
  0x5b   :  { %1748 = vst [vmem:[#allocation78_spill] sm:$0xff] %v1148_v58  ;;  %v170_v43 = vld.sshfl [vmem:[#allocation1 + $0x8] sm:$0xff pattern:$0x73625140]  ;;  %317 = vmatpush.msrb.mxu2 %v1176_v53  ;;  %336 = vmatpush.msrb.mxu3 %v1180_v50 }
  0x5c   :  { %1749 = vst [vmem:[#allocation79_spill] sm:$0xff] %v1150_v61  ;;  %201 = vmatmul.f32.vlgmr.msra.gmra.mxu0 %v169_v51  ;;  %261 = vmatmul.f32.vlgmr.msra.gmra.mxu3 %v172_v59  ;;  %v1765_v59 = vld [vmem:[#allocation22_spill] sm:$0xff]  ;;  %v1767_v51 = vld [vmem:[#allocation23_spill] sm:$0xff] }
  0x5d   :  { %1750 = vst [vmem:[#allocation80_spill] sm:$0xff] %v1154_v63  ;;  %v175_v61 = vld.sshfl [vmem:[#allocation1 + $0x30] sm:$0xff pattern:$0x73625140]  ;;  %337 = vmatpush.msrb.mxu3 %v1194_v44  ;;  %221 = vmatmul.f32.vlgmr.msra.gmra.mxu1 %v170_v43 }
  0x5e   :  { %1751 = vst [vmem:[#allocation81_spill] sm:$0xff] %v1156_v62  ;;  %v173_v58 = vld.sshfl [vmem:[#allocation1 + $0x20] sm:$0xff pattern:$0x73625140]  ;;  %v1192_v62 = vld [vmem:[#allocation2 + $0x310] sm:$0xff]  ;;  %v1761_v43 = vld [vmem:[#allocation18_spill] sm:$0xff] }
  0x5f   :  { %1752 = vst [vmem:[#allocation82_spill] sm:$0xff] %v1162_v47  ;;  %v176_v60 = vld.sshfl [vmem:[#allocation1 + $0x38] sm:$0xff pattern:$0x73625140]  ;;  %318 = vmatpush.msrb.mxu2 %v1192_v62 }
  0x60   :  { %1753 = vst [vmem:[#allocation83_spill] sm:$0xff] %v1164_v52  ;;  %v174_v63 = vld.sshfl [vmem:[#allocation1 + $0x28] sm:$0xff pattern:$0x73625140]  ;;  %v1200_v52 = vld [vmem:[#allocation2 + $0x290] sm:$0xff] }
  0x61   :  { %1754 = vst [vmem:[#allocation84_spill] sm:$0xff] %v1170_v55  ;;  %v1204_v55 = vld [vmem:[#allocation2 + $0x308] sm:$0xff]  ;;  %298 = vmatpush.msrb.mxu1 %v1200_v52 }
  0x62   :  { %1755 = vst [vmem:[#allocation85_spill] sm:$0xff] %v1172_v54  ;;  %v1206_v54 = vld [vmem:[#allocation2 + $0x390] sm:$0xff]  ;;  %319 = vmatpush.msrb.mxu2 %v1204_v55 }
  0x63   :  { %1756 = vst [vmem:[#allocation86_spill] sm:$0xff] %v1176_v53  ;;  %v1216_v53 = vld [vmem:[#allocation2 + $0x300] sm:$0xff]  ;;  %338 = vmatpush.msrb.mxu3 %v1206_v54 }
  0x64   :  { %1757 = vst [vmem:[#allocation87_spill] sm:$0xff] %v1180_v50  ;;  %v1214_v50 = vld [vmem:[#allocation2 + $0x288] sm:$0xff]  ;;  %320 = vmatpush.msrb.mxu2 %v1216_v53 }
  0x65   :  { %1758 = vst [vmem:[#allocation88_spill] sm:$0xff] %v1184_v42  ;;  %v1220_v42 = vld [vmem:[#allocation2 + $0x388] sm:$0xff]  ;;  %299 = vmatpush.msrb.mxu1 %v1214_v50  ;;  %321 = vmatmul.f32.vlgmr.msrb.gmra.mxu2 %v175_v61  ;;  %v1764_v61 = vld [vmem:[#allocation17_spill] sm:$0xff] }
  0x66   :  { %349 = vst [vmem:[#allocation1] ss:$4 sm:$0xff] %v345_v49  ;;  %v1198_v49 = vld [vmem:[#allocation2 + $0x208] sm:$0xff]  ;;  %339 = vmatpush.msrb.mxu3 %v1220_v42  ;;  %408 = vmatpush.msra.mxu2 %v832_v1 }
  0x67   :  { %351 = vst [vmem:[#allocation1 + $0x20] ss:$4 sm:$0xff] %v346_v45  ;;  %v1210_v45 = vld [vmem:[#allocation2 + $0x200] sm:$0xff]  ;;  %279 = vmatpush.msrb.mxu0 %v1198_v49 }
  0x68   :  { %1759 = vst [vmem:[#allocation89_spill] sm:$0xff] %v1198_v49  ;;  %v1225_v49 = vld [vmem:[#allocation2 + $0x280] sm:$0xff]  ;;  %409 = vmatpush.msra.mxu2 %v840_v4 }
  0x69   :  { %1760 = vst [vmem:[#allocation90_spill] sm:$0xff] %v1200_v52  ;;  %280 = vmatpush.msrb.mxu0 %v1210_v45  ;;  %v1228_v52 = vld [vmem:[#allocation2 + $0x380] sm:$0xff]  ;;  %300 = vmatpush.msrb.mxu1 %v1225_v49 }
  0x6a   :  { %340 = vmatpush.msrb.mxu3 %v1228_v52  ;;  %410 = vmatpush.msra.mxu2 %v850_v8 }
  0x6b   :  { %368 = vmatpush.msra.mxu0 %v830_v0  ;;  %388 = vmatpush.msra.mxu1 %v838_v3 }
  0x6c   :  { %428 = vmatpush.msra.mxu3 %v842_v5  ;;  %411 = vmatpush.msra.mxu2 %v862_v12 }
  0x6d   :  { %369 = vmatpush.msra.mxu0 %v834_v2  ;;  %389 = vmatpush.msra.mxu1 %v848_v7 }
  0x6e   :  { %429 = vmatpush.msra.mxu3 %v854_v9  ;;  %281 = vmatmul.f32.vlgmr.msrb.gmra.mxu0 %v173_v58  ;;  %v1763_v58 = vld [vmem:[#allocation19_spill] sm:$0xff] }
  0x6f   :  { %370 = vmatpush.msra.mxu0 %v846_v6  ;;  %390 = vmatpush.msra.mxu1 %v856_v10 }
  0x70   :  { %430 = vmatpush.msra.mxu3 %v864_v13  ;;  %412 = vmatpush.msra.mxu2 %v876_v17 }
  0x71   :  { %371 = vmatpush.msra.mxu0 %v860_v11  ;;  %341 = vmatmul.f32.vlgmr.msrb.gmra.mxu3 %v176_v60  ;;  %v1768_v60 = vld [vmem:[#allocation21_spill] sm:$0xff] }
  0x72   :  { %391 = vmatpush.msra.mxu1 %v868_v14  ;;  %431 = vmatpush.msra.mxu3 %v870_v15 }
  0x73   :  { %372 = vmatpush.msra.mxu0 %v874_v16  ;;  %301 = vmatmul.f32.vlgmr.msrb.gmra.mxu1 %v174_v63  ;;  %v1766_v63 = vld [vmem:[#allocation20_spill] sm:$0xff] }
  0x74   :  { %392 = vmatpush.msra.mxu1 %v880_v18  ;;  %413 = vmatpush.msra.mxu2 %v888_v21 }
  0x75   :  { %373 = vmatpush.msra.mxu0 %v886_v20  ;;  %432 = vmatpush.msra.mxu3 %v882_v19 }
  0x76   :  { %393 = vmatpush.msra.mxu1 %v892_v22  ;;  %414 = vmatpush.msra.mxu2 %v900_v25 }
  0x77   :  { %374 = vmatpush.msra.mxu0 %v898_v24  ;;  %433 = vmatpush.msra.mxu3 %v894_v23 }
  0x78   :  { %394 = vmatpush.msra.mxu1 %v904_v26  ;;  %415 = vmatpush.msra.mxu2 %v912_v29 }
  0x79   :  { %375 = vmatpush.msra.mxu0 %v910_v28  ;;  %434 = vmatpush.msra.mxu3 %v906_v27 }
  0x7a   :  { %395 = vmatpush.msra.mxu1 %v916_v30  ;;  %416 = vmatpush.msra.mxu2 %v924_v33  ;;  %v1817_v33 = vld [vmem:[#allocation72_spill] sm:$0xff]  ;;  %v1820_v30 = vld [vmem:[#allocation75_spill] sm:$0xff] }
  0x7b   :  { %376 = vmatpush.msra.mxu0 %v922_v32  ;;  %435 = vmatpush.msra.mxu3 %v918_v31  ;;  %v359_v31 = vld.sshfl [vmem:[#allocation1 + $0x38] sm:$0xff pattern:$0x73625140] }
  0x7c   :  { %396 = vmatpush.msra.mxu1 %v928_v34  ;;  %417 = vmatpush.msra.mxu2 %v936_v37  ;;  %v1798_v37 = vld [vmem:[#allocation52_spill] sm:$0xff]  ;;  %v1799_v34 = vld [vmem:[#allocation53_spill] sm:$0xff] }
  0x7d   :  { %377 = vmatpush.msra.mxu0 %v934_v36  ;;  %436 = vmatpush.msra.mxu3 %v930_v35  ;;  %v1795_v35 = vld [vmem:[#allocation49_spill] sm:$0xff]  ;;  %v356_v36 = vld.sshfl [vmem:[#allocation1 + $0x20] sm:$0xff pattern:$0x73625140] }
  0x7e   :  { %397 = vmatpush.msra.mxu1 %v940_v38  ;;  %418 = vmatpush.msra.mxu2 %v948_v41  ;;  %v1769_v38 = vld [vmem:[#allocation26_spill] sm:$0xff]  ;;  %v1770_v41 = vld [vmem:[#allocation24_spill] sm:$0xff] }
  0x7f   :  { %378 = vmatpush.msra.mxu0 %v946_v40  ;;  %437 = vmatpush.msra.mxu3 %v942_v39  ;;  %v1771_v39 = vld [vmem:[#allocation27_spill] sm:$0xff] }
  0x80   :  { %398 = vmatpush.msra.mxu1 %v1762_v48  ;;  %419 = vmatpush.msra.mxu2 %v1763_v58  ;;  %v1773_v48 = vld [vmem:[#allocation30_spill] sm:$0xff]  ;;  %v1774_v58 = vld [vmem:[#allocation28_spill] sm:$0xff]  ;;  %v1789_v40 = vld [vmem:[#allocation43_spill] sm:$0xff] }
  0x81   :  { %379 = vmatpush.msra.mxu0 %v1761_v43  ;;  %438 = vmatpush.msra.mxu3 %v1764_v61  ;;  %v1772_v43 = vld [vmem:[#allocation25_spill] sm:$0xff]  ;;  %v1775_v61 = vld [vmem:[#allocation31_spill] sm:$0xff] }
  0x82   :  { %399 = vmatpush.msra.mxu1 %v1766_v63  ;;  %420 = vmatpush.msra.mxu2 %v1767_v51  ;;  %v1777_v63 = vld [vmem:[#allocation34_spill] sm:$0xff]  ;;  %v1778_v51 = vld [vmem:[#allocation32_spill] sm:$0xff] }
  0x83   :  { %380 = vmatpush.msra.mxu0 %v1765_v59  ;;  %439 = vmatpush.msra.mxu3 %v1768_v60  ;;  %v1776_v59 = vld [vmem:[#allocation29_spill] sm:$0xff]  ;;  %v1779_v60 = vld [vmem:[#allocation35_spill] sm:$0xff] }
  0x84   :  { %400 = vmatpush.msra.mxu1 %v1770_v41  ;;  %421 = vmatpush.msra.mxu2 %v1771_v39  ;;  %v1781_v41 = vld [vmem:[#allocation62_spill] sm:$0xff] }
  0x85   :  { %381 = vmatpush.msra.mxu0 %v1769_v38  ;;  %440 = vmatpush.msra.mxu3 %v1772_v43  ;;  %v1780_v38 = vld [vmem:[#allocation33_spill] sm:$0xff]  ;;  %v528_v39 = vmul.f32 %v1781_v41, %v1781_v41  ;;  %v1782_v43 = vld [vmem:[#allocation36_spill] sm:$0xff]  ;;  %v1308_v41 = vld.sshfl [vmem:[#allocation1 + $0x18] sm:$0xff pattern:$0x73625140] }
  0x86   :  { %401 = vmatpush.msra.mxu1 %v1774_v58  ;;  %422 = vmatpush.msra.mxu2 %v1775_v61  ;;  %v1784_v58 = vld [vmem:[#allocation38_spill] sm:$0xff]  ;;  %v1785_v61 = vld [vmem:[#allocation39_spill] sm:$0xff] }
  0x87   :  { %382 = vmatpush.msra.mxu0 %v1773_v48  ;;  %441 = vmatpush.msra.mxu3 %v1776_v59  ;;  %v1783_v48 = vld [vmem:[#allocation37_spill] sm:$0xff]  ;;  %v1786_v59 = vld [vmem:[#allocation40_spill] sm:$0xff] }
  0x88   :  { %402 = vmatpush.msra.mxu1 %v1778_v51  ;;  %423 = vmatpush.msra.mxu2 %v1779_v60  ;;  %v1302_v51 = vld.sshfl [vmem:[#allocation1 + $0x10] sm:$0xff pattern:$0x73625140]  ;;  %v1304_v60 = vld.sshfl [vmem:[#allocation1] sm:$0xff pattern:$0x73625140] }
  0x89   :  { %383 = vmatpush.msra.mxu0 %v1777_v63  ;;  %442 = vmatpush.msra.mxu3 %v1780_v38  ;;  %v1787_v63 = vld [vmem:[#allocation41_spill] sm:$0xff]  ;;  %v1788_v38 = vld [vmem:[#allocation42_spill] sm:$0xff] }
  0x8a   :  { %488 = vmatpush.msrb.mxu2 %v1783_v48  ;;  %403 = vmatpush.msra.mxu1 %v1784_v58  ;;  %v1790_v48 = vld [vmem:[#allocation44_spill] sm:$0xff]  ;;  %v1791_v58 = vld [vmem:[#allocation45_spill] sm:$0xff] }
  0x8b   :  { %448 = vmatpush.msrb.mxu0 %v1782_v43  ;;  %443 = vmatpush.msra.mxu3 %v1785_v61  ;;  %v1310_v43 = vld.sshfl [vmem:[#allocation1 + $0x8] sm:$0xff pattern:$0x73625140]  ;;  %v1794_v61 = vld [vmem:[#allocation48_spill] sm:$0xff] }
  0x8c   :  { %468 = vmatpush.msrb.mxu1 %v1787_v63  ;;  %489 = vmatpush.msrb.mxu2 %v1788_v38  ;;  %532 = vst [vmem:[#allocation1] ss:$4 sm:$0xff] %v528_v39  ;;  %v1793_v63 = vld [vmem:[#allocation47_spill] sm:$0xff]  ;;  %v1796_v38 = vld [vmem:[#allocation50_spill] sm:$0xff] }
  0x8d   :  { %449 = vmatpush.msrb.mxu0 %v1786_v59  ;;  %508 = vmatpush.msrb.mxu3 %v1789_v40  ;;  %v1792_v59 = vld [vmem:[#allocation46_spill] sm:$0xff]  ;;  %v1797_v40 = vld [vmem:[#allocation51_spill] sm:$0xff] }
  0x8e   :  { %469 = vmatpush.msrb.mxu1 %v1791_v58  ;;  %490 = vmatpush.msrb.mxu2 %v1792_v59  ;;  %v1801_v58 = vld [vmem:[#allocation55_spill] sm:$0xff] }
  0x8f   :  { %450 = vmatpush.msrb.mxu0 %v1790_v48  ;;  %509 = vmatpush.msrb.mxu3 %v1793_v63  ;;  %v1800_v48 = vld [vmem:[#allocation54_spill] sm:$0xff]  ;;  %v1802_v39 = vld [vmem:[#allocation67_spill] sm:$0xff]  ;;  %v1803_v63 = vld [vmem:[#allocation56_spill] sm:$0xff] }
  0x90   :  { %470 = vmatpush.msrb.mxu1 %v1795_v35  ;;  %491 = vmatpush.msrb.mxu2 %v1796_v38  ;;  %v529_v59 = vmul.f32 %v1802_v39, %v1802_v39  ;;  %v1805_v35 = vld [vmem:[#allocation58_spill] sm:$0xff]  ;;  %v1806_v38 = vld [vmem:[#allocation59_spill] sm:$0xff]  ;;  %v1334_v39 = vld.sshfl [vmem:[#allocation1 + $0x28] sm:$0xff pattern:$0x73625140] }
  0x91   :  { %451 = vmatpush.msrb.mxu0 %v1794_v61  ;;  %510 = vmatpush.msrb.mxu3 %v1797_v40  ;;  %v1804_v61 = vld [vmem:[#allocation57_spill] sm:$0xff]  ;;  %v1807_v40 = vld [vmem:[#allocation60_spill] sm:$0xff] }
  0x92   :  { %471 = vmatpush.msrb.mxu1 %v1799_v34  ;;  %492 = vmatpush.msrb.mxu2 %v1800_v48  ;;  %v358_v34 = vld.sshfl [vmem:[#allocation1 + $0x30] sm:$0xff pattern:$0x73625140]  ;;  %v1809_v48 = vld [vmem:[#allocation63_spill] sm:$0xff] }
  0x93   :  { %452 = vmatpush.msrb.mxu0 %v1798_v37  ;;  %511 = vmatpush.msrb.mxu3 %v1801_v58  ;;  %v1808_v37 = vld [vmem:[#allocation61_spill] sm:$0xff]  ;;  %v1810_v58 = vld [vmem:[#allocation64_spill] sm:$0xff]  ;;  %534 = vst [vmem:[#allocation1 + $0x20] ss:$4 sm:$0xff] %v529_v59  ;;  %v1823_v59 = vld [vmem:[#allocation78_spill] sm:$0xff] }
  0x94   :  { %472 = vmatpush.msrb.mxu1 %v1804_v61  ;;  %493 = vmatpush.msrb.mxu2 %v1805_v35  ;;  %v1812_v61 = vld [vmem:[#allocation66_spill] sm:$0xff]  ;;  %v1813_v35 = vld [vmem:[#allocation68_spill] sm:$0xff] }
  0x95   :  { %453 = vmatpush.msrb.mxu0 %v1803_v63  ;;  %512 = vmatpush.msrb.mxu3 %v1806_v38  ;;  %v1811_v63 = vld [vmem:[#allocation65_spill] sm:$0xff] }
  0x96   :  { %473 = vmatpush.msrb.mxu1 %v1808_v37  ;;  %494 = vmatpush.msrb.mxu2 %v1809_v48  ;;  %v1814_v38 = vld [vmem:[#allocation69_spill] sm:$0xff]  ;;  %v1816_v37 = vld [vmem:[#allocation71_spill] sm:$0xff] }
  0x97   :  { %454 = vmatpush.msrb.mxu0 %v1807_v40  ;;  %513 = vmatpush.msrb.mxu3 %v1810_v58  ;;  %v1815_v40 = vld [vmem:[#allocation70_spill] sm:$0xff]  ;;  %v1818_v48 = vld [vmem:[#allocation73_spill] sm:$0xff] }
  0x98   :  { %474 = vmatpush.msrb.mxu1 %v1812_v61  ;;  %495 = vmatpush.msrb.mxu2 %v1813_v35  ;;  %v1819_v58 = vld [vmem:[#allocation74_spill] sm:$0xff]  ;;  %v1822_v61 = vld [vmem:[#allocation77_spill] sm:$0xff]  ;;  %v1824_v35 = vld [vmem:[#allocation79_spill] sm:$0xff] }
  0x99   :  { %455 = vmatpush.msrb.mxu0 %v1811_v63  ;;  %514 = vmatpush.msrb.mxu3 %v1814_v38  ;;  %v1821_v63 = vld [vmem:[#allocation76_spill] sm:$0xff] }
  0x9a   :  { %475 = vmatpush.msrb.mxu1 %v1816_v37  ;;  %496 = vmatpush.msrb.mxu2 %v1817_v33  ;;  %v1825_v38 = vld [vmem:[#allocation80_spill] sm:$0xff] }
  0x9b   :  { %456 = vmatpush.msrb.mxu0 %v1815_v40  ;;  %515 = vmatpush.msrb.mxu3 %v1818_v48  ;;  %v1826_v40 = vld [vmem:[#allocation81_spill] sm:$0xff]  ;;  %v1827_v48 = vld [vmem:[#allocation83_spill] sm:$0xff] }
  0x9c   :  { %476 = vmatpush.msrb.mxu1 %v1820_v30  ;;  %497 = vmatpush.msrb.mxu2 %v1821_v63  ;;  %v1828_v30 = vld [vmem:[#allocation84_spill] sm:$0xff]  ;;  %v1829_v63 = vld [vmem:[#allocation85_spill] sm:$0xff] }
  0x9d   :  { %457 = vmatpush.msrb.mxu0 %v1819_v58  ;;  %516 = vmatpush.msrb.mxu3 %v1822_v61  ;;  %v1830_v61 = vld [vmem:[#allocation86_spill] sm:$0xff] }
  0x9e   :  { %477 = vmatpush.msrb.mxu1 %v1824_v35  ;;  %498 = vmatpush.msrb.mxu2 %v1825_v38  ;;  %v1832_v38 = vld [vmem:[#allocation88_spill] sm:$0xff] }
  0x9f   :  { %458 = vmatpush.msrb.mxu0 %v1823_v59  ;;  %517 = vmatpush.msrb.mxu3 %v1826_v40  ;;  %v1831_v59 = vld [vmem:[#allocation87_spill] sm:$0xff] }
  0xa0   :  { %478 = vmatpush.msrb.mxu1 %v1162_v47  ;;  %499 = vmatpush.msrb.mxu2 %v1827_v48  ;;  %v1833_v47 = vld [vmem:[#allocation89_spill] sm:$0xff]  ;;  %v1834_v48 = vld [vmem:[#allocation90_spill] sm:$0xff] }
  0xa1   :  { %459 = vmatpush.msrb.mxu0 %v1158_v57  ;;  %518 = vmatpush.msrb.mxu3 %v1166_v46 }
  0xa2   :  { %479 = vmatpush.msrb.mxu1 %v1829_v63  ;;  %500 = vmatpush.msrb.mxu2 %v1830_v61 }
  0xa3   :  { %460 = vmatpush.msrb.mxu0 %v1828_v30  ;;  %519 = vmatpush.msrb.mxu3 %v1831_v59 }
  0xa4   :  { %480 = vmatpush.msrb.mxu1 %v1832_v38  ;;  %501 = vmatpush.msrb.mxu2 %v1192_v62 }
  0xa5   :  { %461 = vmatpush.msrb.mxu0 %v1182_v56  ;;  %520 = vmatpush.msrb.mxu3 %v1194_v44 }
  0xa6   :  { %481 = vmatpush.msrb.mxu1 %v1834_v48  ;;  %502 = vmatpush.msrb.mxu2 %v1204_v55 }
  0xa7   :  { %462 = vmatpush.msrb.mxu0 %v1833_v47  ;;  %521 = vmatpush.msrb.mxu3 %v1206_v54 }
  0xa8   :  { %424 = vmatmul.f32.vlgmr.msra.gmra.mxu2 %v1302_v51  ;;  %482 = vmatpush.msrb.mxu1 %v1214_v50  ;;  %v1870_v51 = vld [vmem:[#allocation40_spill] sm:$0xff] }
  0xa9   :  { %463 = vmatpush.msrb.mxu0 %v1210_v45  ;;  %503 = vmatpush.msrb.mxu2 %v1216_v53 }
  0xaa   :  { %522 = vmatpush.msrb.mxu3 %v1220_v42  ;;  %384 = vmatmul.f32.vlgmr.msra.gmra.mxu0 %v1304_v60  ;;  %v1871_v60 = vld [vmem:[#allocation41_spill] sm:$0xff] }
  0xab   :  { %444 = vmatmul.f32.vlgmr.msra.gmra.mxu3 %v1308_v41  ;;  %551 = vmatpush.msra.mxu0 %v830_v0  ;;  %v1835_v0 = vld [vmem:[#allocation5_spill] sm:$0xff]  ;;  %v1872_v41 = vld [vmem:[#allocation42_spill] sm:$0xff] }
  0xac   :  { %591 = vmatpush.msra.mxu2 %v832_v1  ;;  %483 = vmatpush.msrb.mxu1 %v1225_v49  ;;  %v1836_v1 = vld [vmem:[#allocation7_spill] sm:$0xff] }
  0xad   :  { %523 = vmatpush.msrb.mxu3 %v1228_v52  ;;  %404 = vmatmul.f32.vlgmr.msra.gmra.mxu1 %v1310_v43  ;;  %v1869_v43 = vld [vmem:[#allocation39_spill] sm:$0xff] }
  0xae   :  { %552 = vmatpush.msra.mxu0 %v834_v2  ;;  %571 = vmatpush.msra.mxu1 %v838_v3  ;;  %v1837_v2 = vld [vmem:[#allocation6_spill] sm:$0xff] }
  0xaf   :  { %592 = vmatpush.msra.mxu2 %v840_v4  ;;  %611 = vmatpush.msra.mxu3 %v842_v5  ;;  %v1838_v3 = vld [vmem:[#allocation10_spill] sm:$0xff]  ;;  %v1839_v4 = vld [vmem:[#allocation8_spill] sm:$0xff]  ;;  %v1840_v5 = vld [vmem:[#allocation11_spill] sm:$0xff] }
  0xb0   :  { %553 = vmatpush.msra.mxu0 %v846_v6  ;;  %572 = vmatpush.msra.mxu1 %v848_v7  ;;  %v1841_v6 = vld [vmem:[#allocation9_spill] sm:$0xff]  ;;  %v1842_v7 = vld [vmem:[#allocation14_spill] sm:$0xff] }
  0xb1   :  { %593 = vmatpush.msra.mxu2 %v850_v8  ;;  %612 = vmatpush.msra.mxu3 %v854_v9  ;;  %v1843_v8 = vld [vmem:[#allocation12_spill] sm:$0xff]  ;;  %v1844_v9 = vld [vmem:[#allocation15_spill] sm:$0xff] }
  0xb2   :  { %504 = vmatmul.f32.vlgmr.msrb.gmra.mxu2 %v358_v34  ;;  %554 = vmatpush.msra.mxu0 %v860_v11  ;;  %v1846_v11 = vld [vmem:[#allocation18_spill] sm:$0xff]  ;;  %v1867_v34 = vld [vmem:[#allocation37_spill] sm:$0xff] }
  0xb3   :  { %573 = vmatpush.msra.mxu1 %v856_v10  ;;  %594 = vmatpush.msra.mxu2 %v862_v12  ;;  %v1845_v10 = vld [vmem:[#allocation13_spill] sm:$0xff]  ;;  %v1847_v12 = vld [vmem:[#allocation16_spill] sm:$0xff] }
  0xb4   :  { %613 = vmatpush.msra.mxu3 %v864_v13  ;;  %464 = vmatmul.f32.vlgmr.msrb.gmra.mxu0 %v356_v36  ;;  %v1848_v13 = vld [vmem:[#allocation19_spill] sm:$0xff]  ;;  %v1868_v36 = vld [vmem:[#allocation38_spill] sm:$0xff] }
  0xb5   :  { %524 = vmatmul.f32.vlgmr.msrb.gmra.mxu3 %v359_v31  ;;  %555 = vmatpush.msra.mxu0 %v874_v16  ;;  %v1851_v16 = vld [vmem:[#allocation20_spill] sm:$0xff]  ;;  %v1865_v31 = vld [vmem:[#allocation33_spill] sm:$0xff] }
  0xb6   :  { %574 = vmatpush.msra.mxu1 %v868_v14  ;;  %595 = vmatpush.msra.mxu2 %v876_v17  ;;  %v1849_v14 = vld [vmem:[#allocation17_spill] sm:$0xff]  ;;  %v1852_v17 = vld [vmem:[#allocation23_spill] sm:$0xff] }
  0xb7   :  { %614 = vmatpush.msra.mxu3 %v870_v15  ;;  %484 = vmatmul.f32.vlgmr.msrb.gmra.mxu1 %v1334_v39  ;;  %v1850_v15 = vld [vmem:[#allocation22_spill] sm:$0xff]  ;;  %v1873_v39 = vld [vmem:[#allocation43_spill] sm:$0xff] }
  0xb8   :  { %556 = vmatpush.msra.mxu0 %v886_v20  ;;  %575 = vmatpush.msra.mxu1 %v880_v18  ;;  %v1853_v18 = vld [vmem:[#allocation21_spill] sm:$0xff]  ;;  %v1855_v20 = vld [vmem:[#allocation24_spill] sm:$0xff] }
  0xb9   :  { %596 = vmatpush.msra.mxu2 %v888_v21  ;;  %615 = vmatpush.msra.mxu3 %v882_v19  ;;  %v1854_v19 = vld [vmem:[#allocation26_spill] sm:$0xff]  ;;  %v1856_v21 = vld [vmem:[#allocation27_spill] sm:$0xff] }
  0xba   :  { %557 = vmatpush.msra.mxu0 %v898_v24  ;;  %576 = vmatpush.msra.mxu1 %v892_v22  ;;  %v1857_v22 = vld [vmem:[#allocation25_spill] sm:$0xff]  ;;  %v1859_v24 = vld [vmem:[#allocation28_spill] sm:$0xff] }
  0xbb   :  { %597 = vmatpush.msra.mxu2 %v900_v25  ;;  %616 = vmatpush.msra.mxu3 %v894_v23  ;;  %v1858_v23 = vld [vmem:[#allocation30_spill] sm:$0xff]  ;;  %v1860_v25 = vld [vmem:[#allocation31_spill] sm:$0xff] }
  0xbc   :  { %558 = vmatpush.msra.mxu0 %v910_v28  ;;  %577 = vmatpush.msra.mxu1 %v904_v26  ;;  %v1861_v26 = vld [vmem:[#allocation29_spill] sm:$0xff]  ;;  %v1863_v28 = vld [vmem:[#allocation32_spill] sm:$0xff] }
  0xbd   :  { %598 = vmatpush.msra.mxu2 %v912_v29  ;;  %617 = vmatpush.msra.mxu3 %v906_v27  ;;  %v1862_v27 = vld [vmem:[#allocation34_spill] sm:$0xff]  ;;  %v1864_v29 = vld [vmem:[#allocation35_spill] sm:$0xff] }
  0xbe   :  { %559 = vmatpush.msra.mxu0 %v922_v32  ;;  %578 = vmatpush.msra.mxu1 %v1835_v0  ;;  %v1866_v32 = vld [vmem:[#allocation36_spill] sm:$0xff] }
  0xbf   :  { %599 = vmatpush.msra.mxu2 %v1836_v1  ;;  %618 = vmatpush.msra.mxu3 %v1837_v2  ;;  %v1874_v0 = vld [vmem:[#allocation44_spill] sm:$0xff]  ;;  %v1875_v1 = vld [vmem:[#allocation45_spill] sm:$0xff]  ;;  %v1876_v2 = vld [vmem:[#allocation46_spill] sm:$0xff] }
  0xc0   :  { %560 = vmatpush.msra.mxu0 %v1838_v3  ;;  %579 = vmatpush.msra.mxu1 %v1839_v4  ;;  %v1877_v3 = vld [vmem:[#allocation47_spill] sm:$0xff]  ;;  %v1878_v4 = vld [vmem:[#allocation48_spill] sm:$0xff] }
  0xc1   :  { %600 = vmatpush.msra.mxu2 %v1840_v5  ;;  %619 = vmatpush.msra.mxu3 %v1841_v6  ;;  %v1879_v5 = vld [vmem:[#allocation49_spill] sm:$0xff]  ;;  %v1880_v6 = vld [vmem:[#allocation50_spill] sm:$0xff] }
  0xc2   :  { %561 = vmatpush.msra.mxu0 %v1842_v7  ;;  %580 = vmatpush.msra.mxu1 %v1843_v8  ;;  %v1881_v7 = vld [vmem:[#allocation51_spill] sm:$0xff]  ;;  %v1882_v8 = vld [vmem:[#allocation52_spill] sm:$0xff] }
  0xc3   :  { %601 = vmatpush.msra.mxu2 %v1844_v9  ;;  %620 = vmatpush.msra.mxu3 %v1845_v10  ;;  %v1883_v9 = vld [vmem:[#allocation53_spill] sm:$0xff]  ;;  %v1884_v10 = vld [vmem:[#allocation54_spill] sm:$0xff] }
  0xc4   :  { %562 = vmatpush.msra.mxu0 %v1846_v11  ;;  %581 = vmatpush.msra.mxu1 %v1847_v12  ;;  %v1885_v11 = vld [vmem:[#allocation55_spill] sm:$0xff]  ;;  %v1886_v12 = vld [vmem:[#allocation56_spill] sm:$0xff] }
  0xc5   :  { %602 = vmatpush.msra.mxu2 %v1848_v13  ;;  %621 = vmatpush.msra.mxu3 %v1849_v14  ;;  %v1887_v13 = vld [vmem:[#allocation57_spill] sm:$0xff]  ;;  %v1888_v14 = vld [vmem:[#allocation58_spill] sm:$0xff] }
  0xc6   :  { %563 = vmatpush.msra.mxu0 %v1850_v15  ;;  %582 = vmatpush.msra.mxu1 %v1851_v16  ;;  %v1889_v15 = vld [vmem:[#allocation59_spill] sm:$0xff]  ;;  %v1890_v16 = vld [vmem:[#allocation60_spill] sm:$0xff] }
  0xc7   :  { %603 = vmatpush.msra.mxu2 %v1852_v17  ;;  %622 = vmatpush.msra.mxu3 %v1853_v18  ;;  %v1891_v17 = vld [vmem:[#allocation61_spill] sm:$0xff]  ;;  %v1892_v18 = vld [vmem:[#allocation63_spill] sm:$0xff] }
  0xc8   :  { %564 = vmatpush.msra.mxu0 %v1854_v19  ;;  %583 = vmatpush.msra.mxu1 %v1855_v20  ;;  %v1893_v19 = vld [vmem:[#allocation64_spill] sm:$0xff]  ;;  %v1894_v20 = vld [vmem:[#allocation65_spill] sm:$0xff] }
  0xc9   :  { %604 = vmatpush.msra.mxu2 %v1856_v21  ;;  %623 = vmatpush.msra.mxu3 %v1857_v22  ;;  %v1895_v21 = vld [vmem:[#allocation66_spill] sm:$0xff]  ;;  %v1896_v22 = vld [vmem:[#allocation68_spill] sm:$0xff] }
  0xca   :  { %565 = vmatpush.msra.mxu0 %v1858_v23  ;;  %584 = vmatpush.msra.mxu1 %v1859_v24  ;;  %v1897_v23 = vld [vmem:[#allocation69_spill] sm:$0xff]  ;;  %v1898_v24 = vld [vmem:[#allocation70_spill] sm:$0xff] }
  0xcb   :  { %605 = vmatpush.msra.mxu2 %v1860_v25  ;;  %624 = vmatpush.msra.mxu3 %v1861_v26  ;;  %v1899_v25 = vld [vmem:[#allocation73_spill] sm:$0xff]  ;;  %v1900_v26 = vld [vmem:[#allocation75_spill] sm:$0xff] }
  0xcc   :  { %566 = vmatpush.msra.mxu0 %v1862_v27  ;;  %585 = vmatpush.msra.mxu1 %v1863_v28  ;;  %v1901_v27 = vld [vmem:[#allocation76_spill] sm:$0xff]  ;;  %v1902_v28 = vld [vmem:[#allocation77_spill] sm:$0xff] }
  0xcd   :  { %606 = vmatpush.msra.mxu2 %v1864_v29  ;;  %625 = vmatpush.msra.mxu3 %v1865_v31  ;;  %v537_v29 = vld.sshfl [vmem:[#allocation1 + $0x10] sm:$0xff pattern:$0x73625140] }
  0xce   :  { %631 = vmatpush.msrb.mxu0 %v1866_v32  ;;  %586 = vmatpush.msra.mxu1 %v1868_v36  ;;  %v1903_v31 = vld [vmem:[#allocation78_spill] sm:$0xff]  ;;  %v1904_v32 = vld [vmem:[#allocation80_spill] sm:$0xff]  ;;  %v536_v36 = vld.sshfl [vmem:[#allocation1 + $0x8] sm:$0xff pattern:$0x73625140] }
  0xcf   :  { %671 = vmatpush.msrb.mxu2 %v1867_v34  ;;  %626 = vmatpush.msra.mxu3 %v1869_v43  ;;  %v1906_v34 = vld [vmem:[#allocation83_spill] sm:$0xff] }
  0xd0   :  { %632 = vmatpush.msrb.mxu0 %v1870_v51  ;;  %651 = vmatpush.msrb.mxu1 %v1871_v60 }
  0xd1   :  { %672 = vmatpush.msrb.mxu2 %v1872_v41  ;;  %691 = vmatpush.msrb.mxu3 %v1873_v39 }
  0xd2   :  { %633 = vmatpush.msrb.mxu0 %v1874_v0  ;;  %652 = vmatpush.msrb.mxu1 %v1875_v1 }
  0xd3   :  { %673 = vmatpush.msrb.mxu2 %v1876_v2  ;;  %692 = vmatpush.msrb.mxu3 %v1877_v3 }
  0xd4   :  { %634 = vmatpush.msrb.mxu0 %v1878_v4  ;;  %653 = vmatpush.msrb.mxu1 %v1879_v5 }
  0xd5   :  { %674 = vmatpush.msrb.mxu2 %v1880_v6  ;;  %693 = vmatpush.msrb.mxu3 %v1881_v7 }
  0xd6   :  { %635 = vmatpush.msrb.mxu0 %v1882_v8  ;;  %654 = vmatpush.msrb.mxu1 %v1883_v9 }
  0xd7   :  { %675 = vmatpush.msrb.mxu2 %v1884_v10  ;;  %694 = vmatpush.msrb.mxu3 %v1885_v11 }
  0xd8   :  { %636 = vmatpush.msrb.mxu0 %v1886_v12  ;;  %655 = vmatpush.msrb.mxu1 %v1887_v13 }
  0xd9   :  { %676 = vmatpush.msrb.mxu2 %v1888_v14  ;;  %695 = vmatpush.msrb.mxu3 %v1889_v15 }
  0xda   :  { %637 = vmatpush.msrb.mxu0 %v1890_v16  ;;  %656 = vmatpush.msrb.mxu1 %v1891_v17 }
  0xdb   :  { %677 = vmatpush.msrb.mxu2 %v1892_v18  ;;  %696 = vmatpush.msrb.mxu3 %v1893_v19 }
  0xdc   :  { %638 = vmatpush.msrb.mxu0 %v1894_v20  ;;  %657 = vmatpush.msrb.mxu1 %v1895_v21 }
  0xdd   :  { %678 = vmatpush.msrb.mxu2 %v1896_v22  ;;  %697 = vmatpush.msrb.mxu3 %v1897_v23 }
  0xde   :  { %639 = vmatpush.msrb.mxu0 %v1898_v24  ;;  %658 = vmatpush.msrb.mxu1 %v1816_v37  ;;  %v538_v37 = vld.sshfl [vmem:[#allocation1 + $0x18] sm:$0xff pattern:$0x73625140] }
  0xdf   :  { %679 = vmatpush.msrb.mxu2 %v1817_v33  ;;  %698 = vmatpush.msrb.mxu3 %v1899_v25  ;;  %v535_v33 = vld.sshfl [vmem:[#allocation1] sm:$0xff pattern:$0x73625140] }
  0xe0   :  { %640 = vmatpush.msrb.mxu0 %v1819_v58  ;;  %659 = vmatpush.msrb.mxu1 %v1900_v26  ;;  %v1905_v58 = vld [vmem:[#allocation82_spill] sm:$0xff] }
  0xe1   :  { %680 = vmatpush.msrb.mxu2 %v1901_v27  ;;  %699 = vmatpush.msrb.mxu3 %v1902_v28 }
  0xe2   :  { %641 = vmatpush.msrb.mxu0 %v1903_v31  ;;  %660 = vmatpush.msrb.mxu1 %v1824_v35  ;;  %v541_v35 = vld.sshfl [vmem:[#allocation1 + $0x30] sm:$0xff pattern:$0x73625140] }
  0xe3   :  { %681 = vmatpush.msrb.mxu2 %v1904_v32  ;;  %700 = vmatpush.msrb.mxu3 %v1826_v40  ;;  %v542_v40 = vld.sshfl [vmem:[#allocation1 + $0x38] sm:$0xff pattern:$0x73625140] }
  0xe4   :  { %607 = vmatmul.f32.vlgmr.msra.gmra.mxu2 %v537_v29  ;;  %642 = vmatpush.msrb.mxu0 %v1158_v57 }
  0xe5   :  { %661 = vmatpush.msrb.mxu1 %v1905_v58  ;;  %682 = vmatpush.msrb.mxu2 %v1906_v34 }
  0xe6   :  { %701 = vmatpush.msrb.mxu3 %v1166_v46  ;;  %567 = vmatmul.f32.vlgmr.msra.gmra.mxu0 %v535_v33  ;;  %v222_v46 = vpop.f32.mrf.mxu1 }
  0xe7   :  { %627 = vmatmul.f32.vlgmr.msra.gmra.mxu3 %v538_v37  ;;  %643 = vmatpush.msrb.mxu0 %v1828_v30  ;;  %v539_v30 = vld.sshfl [vmem:[#allocation1 + $0x20] sm:$0xff pattern:$0x73625140] }
  0xe8   :  { %662 = vmatpush.msrb.mxu1 %v1829_v63  ;;  %683 = vmatpush.msrb.mxu2 %v1830_v61 }
  0xe9   :  { %702 = vmatpush.msrb.mxu3 %v1831_v59  ;;  %587 = vmatmul.f32.vlgmr.msra.gmra.mxu1 %v536_v36 }
  0xea   :  { %644 = vmatpush.msrb.mxu0 %v1182_v56  ;;  %663 = vmatpush.msrb.mxu1 %v1832_v38  ;;  %v540_v38 = vld.sshfl [vmem:[#allocation1 + $0x28] sm:$0xff pattern:$0x73625140] }
  0xeb   :  { %684 = vmatpush.msrb.mxu2 %v1192_v62  ;;  %703 = vmatpush.msrb.mxu3 %v1194_v44  ;;  %v202_v44 = vpop.f32.mrf.mxu0 }
  0xec   :  { %645 = vmatpush.msrb.mxu0 %v1833_v47  ;;  %664 = vmatpush.msrb.mxu1 %v1834_v48  ;;  %v242_v47 = vpop.f32.mrf.mxu2  ;;  %v223_v11 = vadd.f32 %v222_v46, %v202_v44 }
  0xed   :  { %685 = vmatpush.msrb.mxu2 %v1204_v55  ;;  %704 = vmatpush.msrb.mxu3 %v1206_v54  ;;  %v262_v54 = vpop.f32.mrf.mxu3 }
  0xee   :  { %646 = vmatpush.msrb.mxu0 %v1210_v45  ;;  %665 = vmatpush.msrb.mxu1 %v1214_v50  ;;  %v243_v16 = vadd.f32 %v242_v47, %v223_v11 }
  0xef   :  { %686 = vmatpush.msrb.mxu2 %v1216_v53  ;;  %705 = vmatpush.msrb.mxu3 %v1220_v42 }
  0xf0   :  { %647 = vmatmul.f32.vlgmr.msrb.gmra.mxu0 %v539_v30  ;;  %687 = vmatmul.f32.vlgmr.msrb.gmra.mxu2 %v541_v35  ;;  %v302_v50 = vpop.f32.mrf.mxu1  ;;  %v263_v19 = vadd.f32 %v262_v54, %v243_v16 }
  0xf1   :  { %666 = vmatpush.msrb.mxu1 %v1225_v49  ;;  %706 = vmatpush.msrb.mxu3 %v1228_v52 }
  0xf2   :  { %667 = vmatmul.f32.vlgmr.msrb.gmra.mxu1 %v540_v38  ;;  %707 = vmatmul.f32.vlgmr.msrb.gmra.mxu3 %v542_v40 }
  0xf3   :  { %v282_v55 = vpop.f32.mrf.mxu0 }
  0xf4   :  { %v322_v56 = vpop.f32.mrf.mxu2  ;;  %v283_v20 = vadd.f32 %v282_v55, %v263_v19 }
  0xf5   :  { %v342_v53 = vpop.f32.mrf.mxu3 }
  0xf6   :  { %v303_v23 = vadd.f32 %v302_v50, %v283_v20 }
  0xf8   :  { %v323_v26 = vadd.f32 %v322_v56, %v303_v23 }
  0xfa   :  { %v343_v29 = vadd.f32 %v342_v53, %v323_v26 }
 0x127   :  { %v385_v57 = vpop.f32.mrf.mxu0 }
 0x12a   :  { %v405_v42 = vpop.f32.mrf.mxu1 }
 0x12b   :  { %v425_v62 = vpop.f32.mrf.mxu2  ;;  %v406_v61 = vadd.f32 %v405_v42, %v385_v57 }
 0x12d   :  { %v426_v59 = vadd.f32 %v425_v62, %v406_v61 }
 0x12e   :  { %v445_v45 = vpop.f32.mrf.mxu3 }
 0x12f   :  { %v446_v51 = vadd.f32 %v445_v45, %v426_v59 }
 0x131   :  { %v465_v48 = vpop.f32.mrf.mxu0 }
 0x132   :  { %v466_v1 = vadd.f32 %v465_v48, %v446_v51 }
 0x134   :  { %v485_v63 = vpop.f32.mrf.mxu1 }
 0x135   :  { %v505_v49 = vpop.f32.mrf.mxu2  ;;  %v486_v5 = vadd.f32 %v485_v63, %v466_v1 }
 0x137   :  { %v506_v8 = vadd.f32 %v505_v49, %v486_v5 }
 0x138   :  { %v525_v52 = vpop.f32.mrf.mxu3 }
 0x139   :  { %v526_v14 = vadd.f32 %v525_v52, %v506_v8 }
 0x163   :  { %v568_v43 = vpop.f32.mrf.mxu0 }
 0x166   :  { %v588_v60 = vpop.f32.mrf.mxu1 }
 0x167   :  { %v589_v41 = vadd.f32 %v588_v60, %v568_v43  ;;  %v608_v39 = vpop.f32.mrf.mxu2 }
 0x169   :  { %v609_v0 = vadd.f32 %v608_v39, %v589_v41 }
 0x16a   :  { %v628_v2 = vpop.f32.mrf.mxu3 }
 0x16b   :  { %v629_v3 = vadd.f32 %v628_v2, %v609_v0 }
 0x16d   :  { %v648_v4 = vpop.f32.mrf.mxu0 }
 0x16e   :  { %v649_v6 = vadd.f32 %v648_v4, %v629_v3 }
 0x16f   :  { %v668_v7 = vpop.f32.mrf.mxu1 }
 0x170   :  { %v669_v9 = vadd.f32 %v668_v7, %v649_v6 }
 0x173   :  { %v688_v10 = vpop.f32.mrf.mxu2 }
 0x174   :  { %v689_v12 = vadd.f32 %v688_v10, %v669_v9 }
 0x175   :  { %v708_v13 = vpop.f32.mrf.mxu3 }
 0x176   :  { %v709_v15 = vadd.f32 %v708_v13, %v689_v12 }
 0x178   :  { %v711_v17 = vmul.f32 %v709_v15, %v526_v14 }
 0x17a   :  { %v712_v18 = vmax.f32 %v711_v17, 1e-16 }
 0x17c   :  { %774 = vrsqrt.f32 %v712_v18  ;;  %vm719_vm1 = vweird.f32 %v712_v18 }
 0x182   :  { %v775_v21 = vpop.eup %774 }
 0x183   :  { %v714_v22 = vmul.f32 %v775_v21, %v712_v18  ;;  %vm720_vm0 = vweird.f32 %v775_v21 }
 0x184   :  { %vm721_vm2 = vmor %vm719_vm1, %vm720_vm0 }
 0x185   :  { %v715_v24 = vmul.f32 %v775_v21, %v714_v22 }
 0x187   :  { %v716_v25 = vmul.f32 0.5, %v715_v24 }
 0x189   :  { %v717_v27 = vsub.f32 1.5, %v716_v25 }
 0x18b   :  { %v718_v28 = vmul.f32 %v775_v21, %v717_v27 }
 0x18d   :  { %v722_v31 = vsel %vm721_vm2, %v775_v21, %v718_v28 }
 0x18e   :  { %v723_v32 = vmul.f32 %v722_v31, %v343_v29 }
 0x190   :  { %v770_v33 = vclamps-f32 %v723_v32, 0.9999999 }
 0x192   :  { %v726_v37 = vand.u32 2147483647, %v770_v33  ;;  %vm759_vm6 = vcmp.lt.f32.partialorder %v770_v33, 0.0 }
 0x194   :  { %v728_v58 = vsub.f32 1.0, %v726_v37  ;;  %v730_v36 = vmul.f32 %v726_v37, %v726_v37  ;;  %vm727_vm3 = vcmp.gt.f32.partialorder %v726_v37, 0.5 }
 0x196   :  { %v729_v34 = vmul.f32 0.5, %v728_v58 }
 0x198   :  { %v731_v30 = vsel %vm727_vm3, %v729_v34, %v730_v36 }
 0x199   :  { %776 = vrsqrt.f32 %v731_v30  ;;  %v745_v35 = vmul.f32 0.0421632, %v731_v30  ;;  %vm739_vm4 = vcmp.eq.f32.partialorder %v731_v30, inf  ;;  %v742_v62 = vand.u32 2147483648, %v731_v30 }
 0x19a   :  { %vm741_vm5 = vcmp.eq.f32.partialorder %v731_v30, 0.0 }
 0x19b   :  { %v746_v38 = vadd.f32 0.024181312, %v745_v35 }
 0x19d   :  { %v747_v40 = vmul.f32 %v746_v38, %v731_v30 }
 0x19f   :  { %v777_v44 = vpop.eup %776  ;;  %v748_v47 = vadd.f32 0.045470025, %v747_v40 }
 0x1a0   :  { %v733_v46 = vmul.f32 %v777_v44, %v731_v30 }
 0x1a1   :  { %v749_v55 = vmul.f32 %v748_v47, %v731_v30 }
 0x1a2   :  { %v734_v54 = vmul.f32 %v777_v44, %v733_v46 }
 0x1a3   :  { %v750_v53 = vadd.f32 0.074953005, %v749_v55 }
 0x1a4   :  { %v735_v50 = vmul.f32 0.5, %v734_v54 }
 0x1a5   :  { %v751_v45 = vmul.f32 %v750_v53, %v731_v30 }
 0x1a6   :  { %v736_v56 = vsub.f32 1.5, %v735_v50 }
 0x1a7   :  { %v752_v49 = vadd.f32 0.16666752, %v751_v45 }
 0x1a8   :  { %v737_v57 = vmul.f32 %v777_v44, %v736_v56 }
 0x1aa   :  { %v738_v42 = vmul.f32 %v737_v57, %v731_v30 }
 0x1ac   :  { %v740_v48 = vsel %vm739_vm4, %v731_v30, %v738_v42 }
 0x1ad   :  { %v743_v61 = vsel %vm741_vm5, %v742_v62, %v740_v48 }
 0x1ae   :  { %v744_v63 = vsel %vm727_vm3, %v743_v61, %v726_v37 }
 0x1af   :  { %v753_v59 = vmul.f32 %v744_v63, %v731_v30 }
 0x1b1   :  { %v754_v52 = vmul.f32 %v753_v59, %v752_v49 }
 0x1b3   :  { %v755_v43 = vadd.f32 %v754_v52, %v744_v63 }
 0x1b5   :  { %v756_v51 = vmul.f32 2.0, %v755_v43  ;;  %v757_v60 = vsub.f32 1.5707964, %v755_v43 }
 0x1b7   :  { %v758_v41 = vsel %vm727_vm3, %v756_v51, %v757_v60 }
 0x1b8   :  { %v760_v39 = vsub.f32 3.1415927, %v758_v41 }
 0x1ba   :  { %v761_v0 = vsel %vm759_vm6, %v760_v39, %v758_v41 }
 0x1bb   :  { %v762_v1 = vmul.f32 57.29578, %v761_v0 }
 0x1bd   :  { %764 = vst.msk [vmem:[%s1516_s3] sm:$0x3] %vm763_vm7, %v762_v1 }
 0x1be   :  { %769 = vsyncpa [#allocation3], 1 }

</bundles_post_ra>
